<compile_context>
chip_gen: v5e
topology: v5e:2x2
jax: 0.10.0
libtpu: 0.0.40
codegen_flags: <defaults>
</compile_context>

<pallas_src>
import functools
import numpy as np
import jax
import jax.numpy as jnp
from jax.experimental import pallas as pl
from jax.experimental.pallas import tpu as pltpu

_INV_SQRT2 = 0.7071067811865476
_VMEM_LIMIT = 32 * 1024 * 1024  # well inside v7x's 64 MiB physical VMEM


# ----------------------------------------------------------------------------
# Tiled linear kernel (used for decoder_embed / patch_embed projections)
# ----------------------------------------------------------------------------

def _matmul_kernel(x_ref, w_ref, b_ref, o_ref, acc_ref, *, activation):
    @pl.when(pl.program_id(2) == 0)
    def _():
        acc_ref[...] = jnp.zeros_like(acc_ref)

    acc_ref[...] += jnp.dot(x_ref[...], w_ref[...],
                            preferred_element_type=jnp.float32)

    @pl.when(pl.program_id(2) == pl.num_programs(2) - 1)
    def _():
        y = acc_ref[...] + b_ref[...]
        if activation == "gelu":
            y = 0.5 * y * (1.0 + jax.lax.erf(y * _INV_SQRT2))
        o_ref[...] = y.astype(o_ref.dtype)


def pallas_linear(x, w, b, activation=None, *, tm=256, tn=256, tk=512):
    """out = x @ w + b over arbitrary leading dims, tiled (M, N, K) grid."""
    orig = x.shape
    K = orig[-1]
    M = int(np.prod(orig[:-1]))
    N = w.shape[1]
    x2 = x.reshape(M, K).astype(jnp.float32)
    w2 = w.astype(jnp.float32)
    b2 = b.reshape(1, N).astype(jnp.float32)

    def pick(dim, t):
        # full-extent block (always legal) when the dim is small; otherwise a
        # hardware-aligned tile with zero padding.
        if dim <= t:
            return dim, dim
        return t, dim + (-dim % t)

    tm_, Mp = pick(M, tm)
    tn_, Np = pick(N, tn)
    tk_, Kp = pick(K, tk)
    if (Mp, Kp) != (M, K):
        x2 = jnp.pad(x2, ((0, Mp - M), (0, Kp - K)))
    if (Kp, Np) != (K, N):
        w2 = jnp.pad(w2, ((0, Kp - K), (0, Np - N)))
    if Np != N:
        b2 = jnp.pad(b2, ((0, 0), (0, Np - N)))

    out = pl.pallas_call(
        functools.partial(_matmul_kernel, activation=activation),
        out_shape=jax.ShapeDtypeStruct((Mp, Np), jnp.float32),
        grid=(Mp // tm_, Np // tn_, Kp // tk_),
        in_specs=[
            pl.BlockSpec((tm_, tk_), lambda i, j, k: (i, k)),
            pl.BlockSpec((tk_, tn_), lambda i, j, k: (k, j)),
            pl.BlockSpec((1, tn_), lambda i, j, k: (0, j)),
        ],
        out_specs=pl.BlockSpec((tm_, tn_), lambda i, j, k: (i, j)),
        scratch_shapes=[pltpu.VMEM((tm_, tn_), jnp.float32)],
        compiler_params=pltpu.CompilerParams(
            dimension_semantics=("parallel", "parallel", "arbitrary"),
            vmem_limit_bytes=_VMEM_LIMIT),
    )(x2, w2, b2)
    if (Mp, Np) != (M, N):
        out = out[:M, :N]
    return out.reshape(*orig[:-1], N)


# ----------------------------------------------------------------------------
# Fused ViTMAEBottleneckLayer kernel (one pallas_call per layer, grid over B)
# ----------------------------------------------------------------------------

def _bottleneck_layer_kernel(cls_ref, hs_ref, ln1g_ref, ln1b_ref,
                             wqkv_ref, bqkv_ref, wao_ref, bao_ref,
                             ln2g_ref, ln2b_ref, win_ref, bin_ref,
                             wout_ref, bout_ref, o_ref, *, num_heads, eps):
    S = hs_ref.shape[1]
    D = hs_ref.shape[2]
    Dh = D // num_heads

    hs = hs_ref[0].astype(jnp.float32)                       # (S, D)
    cls = cls_ref[0].astype(jnp.float32)                     # (1, D)
    # Substitute the (group-averaged) CLS from the previous layer at row 0.
    row = jax.lax.broadcasted_iota(jnp.int32, (S, D), 0)
    hs = jnp.where(row == 0, jnp.broadcast_to(cls, (S, D)), hs)

    def layer_norm(x, g, b):
        mu = jnp.mean(x, axis=-1, keepdims=True)
        var = jnp.mean((x - mu) ** 2, axis=-1, keepdims=True)
        return (x - mu) * jax.lax.rsqrt(var + eps) * g + b

    # ---- pre-LN self-attention (fused QKV) ----
    x1 = layer_norm(hs, ln1g_ref[...], ln1b_ref[...])
    qkv = jnp.dot(x1, wqkv_ref[...],
                  preferred_element_type=jnp.float32) + bqkv_ref[...]  # (S, 3D)
    scale = 1.0 / float(Dh) ** 0.5
    q = qkv[:, :D] * scale          # fold 1/sqrt(Dh) into q
    k = qkv[:, D:2 * D]
    v = qkv[:, 2 * D:]

    ctx_heads = []
    for h in range(num_heads):
        sl = slice(h * Dh, (h + 1) * Dh)
        s = jnp.einsum("qd,kd->qk", q[:, sl], k[:, sl],
                       preferred_element_type=jnp.float32)   # (S, S)
        m = jnp.max(s, axis=-1, keepdims=True)
        p = jnp.exp(s - m)
        l = jnp.sum(p, axis=-1, keepdims=True)               # (S, 1)
        ctx_h = jnp.dot(p, v[:, sl],
                        preferred_element_type=jnp.float32)  # (S, Dh)
        # deferred softmax normalization (divide the small (S,Dh) context)
        ctx_heads.append(ctx_h * pl.reciprocal(l, approx=False))
    ctx = jnp.concatenate(ctx_heads, axis=-1)                 # (S, D)

    attn = jnp.dot(ctx, wao_ref[...],
                   preferred_element_type=jnp.float32) + bao_ref[...]
    hs = attn + hs                                            # residual

    # ---- MLP ----
    x2 = layer_norm(hs, ln2g_ref[...], ln2b_ref[...])
    mid = jnp.dot(x2, win_ref[...],
                  preferred_element_type=jnp.float32) + bin_ref[...]
    mid = 0.5 * mid * (1.0 + jax.lax.erf(mid * _INV_SQRT2))   # exact GELU
    out = jnp.dot(mid, wout_ref[...],
                  preferred_element_type=jnp.float32) + bout_ref[...]
    out = out + hs                                            # residual

    o_ref[0] = out.astype(o_ref.dtype)


def fused_bottleneck_layer(cls_override, hs, p, cfg):
    B, S, D = hs.shape
    H = cfg["decoder_num_attention_heads"]
    eps = cfg["layer_norm_eps"]
    I = p["inter"]["w"].shape[1]

    wqkv = jnp.concatenate([p["q"]["w"], p["k"]["w"], p["v"]["w"]], axis=1)
    bqkv = jnp.concatenate([p["q"]["b"], p["k"]["b"], p["v"]["b"]])[None, :]

    batch3 = lambda shape: pl.BlockSpec(shape, lambda b: (b, 0, 0))
    rep2 = lambda shape: pl.BlockSpec(shape, lambda b: (0, 0))

    return pl.pallas_call(
        functools.partial(_bottleneck_layer_kernel, num_heads=H, eps=eps),
        out_shape=jax.ShapeDtypeStruct((B, S, D), jnp.float32),
        grid=(B,),
        in_specs=[
            batch3((1, 1, D)),                  # cls override
            batch3((1, S, D)),                  # hidden states
            rep2((1, D)), rep2((1, D)),         # LN1 gamma / beta
            rep2((D, 3 * D)), rep2((1, 3 * D)),  # fused QKV
            rep2((D, D)), rep2((1, D)),         # attention output proj
            rep2((1, D)), rep2((1, D)),         # LN2 gamma / beta
            rep2((D, I)), rep2((1, I)),         # MLP intermediate
            rep2((I, D)), rep2((1, D)),         # MLP output
        ],
        out_specs=batch3((1, S, D)),
        compiler_params=pltpu.CompilerParams(
            dimension_semantics=("parallel",),
            vmem_limit_bytes=_VMEM_LIMIT),
    )(cls_override, hs,
      p["ln_before"]["g"][None, :], p["ln_before"]["b"][None, :],
      wqkv, bqkv,
      p["attn_out"]["w"], p["attn_out"]["b"][None, :],
      p["ln_after"]["g"][None, :], p["ln_after"]["b"][None, :],
      p["inter"]["w"], p["inter"]["b"][None, :],
      p["out"]["w"], p["out"]["b"][None, :])


# ----------------------------------------------------------------------------
# Fused final LayerNorm + decoder_pred (CLS row dropped inside the kernel)
# ----------------------------------------------------------------------------

def _norm_pred_kernel(hs_ref, g_ref, b_ref, w_ref, bias_ref, o_ref, *, eps):
    x = hs_ref[0].astype(jnp.float32)[1:, :]      # drop CLS row -> (S-1, D)
    mu = jnp.mean(x, axis=-1, keepdims=True)
    var = jnp.mean((x - mu) ** 2, axis=-1, keepdims=True)
    y = (x - mu) * jax.lax.rsqrt(var + eps) * g_ref[...] + b_ref[...]
    logits = jnp.dot(y, w_ref[...],
                     preferred_element_type=jnp.float32) + bias_ref[...]
    o_ref[0] = logits.astype(o_ref.dtype)


def fused_norm_pred(hs, g, b, w, bias, eps):
    B, S, D = hs.shape
    N = w.shape[1]
    return pl.pallas_call(
        functools.partial(_norm_pred_kernel, eps=eps),
        out_shape=jax.ShapeDtypeStruct((B, S - 1, N), jnp.float32),
        grid=(B,),
        in_specs=[
            pl.BlockSpec((1, S, D), lambda bb: (bb, 0, 0)),
            pl.BlockSpec((1, D), lambda bb: (0, 0)),
            pl.BlockSpec((1, D), lambda bb: (0, 0)),
            pl.BlockSpec((D, N), lambda bb: (0, 0)),
            pl.BlockSpec((1, N), lambda bb: (0, 0)),
        ],
        out_specs=pl.BlockSpec((1, S - 1, N), lambda bb: (bb, 0, 0)),
        compiler_params=pltpu.CompilerParams(
            dimension_semantics=("parallel",),
            vmem_limit_bytes=_VMEM_LIMIT),
    )(hs, g[None, :], b[None, :], w, bias[None, :])


# ----------------------------------------------------------------------------
# Model glue (plain JAX: patchify, unshuffle gather, CLS group averaging)
# ----------------------------------------------------------------------------

def get_2d_sincos_pos_embed(embed_dim, grid_size, add_cls_token=False):
    def get_1d(dim, pos):
        omega = np.arange(dim // 2, dtype=np.float64) / (dim / 2.0)
        omega = 1.0 / 10000 ** omega
        out = np.einsum("m,d->md", pos, omega)
        return np.concatenate([np.sin(out), np.cos(out)], axis=1)

    grid_h = np.arange(grid_size, dtype=np.float32)
    grid_w = np.arange(grid_size, dtype=np.float32)
    grid = np.meshgrid(grid_w, grid_h)  # w first (MAE convention)
    grid = np.stack(grid, axis=0).reshape([2, 1, grid_size, grid_size])
    emb_h = get_1d(embed_dim // 2, grid[0].reshape(-1))
    emb_w = get_1d(embed_dim // 2, grid[1].reshape(-1))
    emb = np.concatenate([emb_h, emb_w], axis=1)
    if add_cls_token:
        emb = np.concatenate([np.zeros([1, embed_dim]), emb], axis=0)
    return emb.astype(np.float32)


def decoder_forward(params, hidden_states, ids_restore, noised_pixel_values,
                    *, lengths, cfg):
    B = hidden_states.shape[0]
    Dd = cfg["decoder_hidden_size"]
    P = cfg["patch_size"]
    C = cfg["num_channels"]
    num_patches = cfg["num_patches"]
    eps = cfg["layer_norm_eps"]

    # 1) decoder_embed
    x = pallas_linear(hidden_states, params["decoder_embed"]["w"],
                      params["decoder_embed"]["b"])          # (B, len_keep+1, Dd)

    # 2) patch-embed the noised pixels (Conv2d k=s=P  ==  matmul over patches)
    _, _, Himg, Wimg = noised_pixel_values.shape
    Hp, Wp = Himg // P, Wimg // P
    patches = noised_pixel_values.reshape(B, C, Hp, P, Wp, P)
    patches = patches.transpose(0, 2, 4, 1, 3, 5).reshape(B, Hp * Wp, C * P * P)
    noised_tokens = pallas_linear(patches, params["patch_embed"]["w"],
                                  params["patch_embed"]["b"])  # (B, N, Dd)

    # 3) masking / unshuffle  (data-dependent gather on small tensors: plain JAX)
    # TODO(synk): could be folded into the first layer kernel via
    # PrefetchScalarGridSpec row-gather on ids_restore; kept in XLA for clarity.
    len_keep = int(num_patches * (1 - cfg["mask_ratio"]))
    ids_shuffle = jnp.argsort(ids_restore, axis=1)
    ids_noised = ids_shuffle[:, len_keep:]
    noised_tokens = jnp.take_along_axis(
        noised_tokens, jnp.broadcast_to(ids_noised[:, :, None],
                                        (B, ids_noised.shape[1], Dd)), axis=1)
    x_ = jnp.concatenate([x[:, 1:, :], noised_tokens], axis=1)
    x_ = jnp.take_along_axis(
        x_, jnp.broadcast_to(ids_restore[:, :, None], (B, num_patches, Dd)),
        axis=1)
    x = jnp.concatenate([x[:, :1, :], x_], axis=1)            # (B, N+1, Dd)
    hs = x + params["decoder_pos_embed"]                      # sincos pos-embed

    # 4) decoder layers (strategy=None -> ViTMAEBottleneckLayer, fused kernel)
    num_groups = lengths.shape[0]
    seg_ids = jnp.asarray(np.repeat(np.arange(num_groups), np.asarray(lengths)),
                          dtype=jnp.int32)
    lengths_f = jnp.asarray(np.asarray(lengths), dtype=jnp.float32)

    cls_override = hs[:, :1, :]            # first layer: no substitution effect
    for lp in params["layers"]:
        layer_out = fused_bottleneck_layer(cls_override, hs, lp, cfg)
        # CLS group averaging (scatter_add / lengths, broadcast back) — (B, Dd)
        cls = layer_out[:, 0, :]
        gsum = jnp.zeros((num_groups, Dd), jnp.float32).at[seg_ids].add(cls)
        gmean = gsum / lengths_f[:, None]
        cls_override = gmean[seg_ids][:, None, :]              # (B, 1, Dd)
        hs = layer_out

    # 5) final norm + prediction head (CLS row dropped inside the kernel; its
    #    averaged value cannot influence the kept rows of a row-wise LN+Linear).
    logits = fused_norm_pred(hs, params["decoder_norm"]["g"],
                             params["decoder_norm"]["b"],
                             params["decoder_pred"]["w"],
                             params["decoder_pred"]["b"], eps)
    return {"logits": logits, "hidden_states": None, "attentions": None}


# ----------------------------------------------------------------------------
# Deterministic parameter init
# ----------------------------------------------------------------------------

def init_params(key, cfg):
    Dh = cfg["hidden_size"]
    Dd = cfg["decoder_hidden_size"]
    I = cfg["decoder_intermediate_size"]
    P = cfg["patch_size"]
    C = cfg["num_channels"]
    keys = iter(jax.random.split(key, 64))

    def lin(k, fan_in, fan_out):
        return {"w": jax.random.normal(k, (fan_in, fan_out), jnp.float32) * 0.02,
                "b": jnp.zeros((fan_out,), jnp.float32)}

    def ln(dim):
        return {"g": jnp.ones((dim,), jnp.float32),
                "b": jnp.zeros((dim,), jnp.float32)}

    params = {
        "decoder_embed": lin(next(keys), Dh, Dd),
        "patch_embed": lin(next(keys), C * P * P, Dd),
        "decoder_pos_embed": jnp.asarray(
            get_2d_sincos_pos_embed(Dd, int(cfg["num_patches"] ** 0.5),
                                    add_cls_token=True))[None],
        "layers": [],
        "decoder_norm": ln(Dd),
        "decoder_pred": lin(next(keys), Dd, P * P * C),
    }
    for _ in range(cfg["decoder_num_hidden_layers"]):
        params["layers"].append({
            "ln_before": ln(Dd),
            "q": lin(next(keys), Dd, Dd),
            "k": lin(next(keys), Dd, Dd),
            "v": lin(next(keys), Dd, Dd),
            "attn_out": lin(next(keys), Dd, Dd),
            "ln_after": ln(Dd),
            "inter": lin(next(keys), Dd, I),
            "out": lin(next(keys), I, Dd),
        })
    return params


# ----------------------------------------------------------------------------
# Main
# ----------------------------------------------------------------------------

if __name__ == "__main__":
    cfg = dict(
        hidden_size=32,
        decoder_hidden_size=32,
        decoder_num_hidden_layers=2,
        decoder_num_attention_heads=4,
        decoder_intermediate_size=64,
        patch_size=4,
        num_channels=3,
        image_size=16,
        mask_ratio=0.75,
        layer_norm_eps=1e-12,
    )
    cfg["num_patches"] = (cfg["image_size"] // cfg["patch_size"]) ** 2  # 16

    key = jax.random.PRNGKey(0)
    kp, kh, kr, kn = jax.random.split(key, 4)

    params = init_params(kp, cfg)

    B = 4
    lengths = np.array([2, 2], dtype=np.int32)                 # sum(lengths) == B
    len_keep = int(cfg["num_patches"] * (1 - cfg["mask_ratio"]))  # 4

    # encoder output: CLS + kept tokens, encoder hidden size
    hidden_states = jax.random.normal(kh, (B, len_keep + 1, cfg["hidden_size"]),
                                      jnp.float32)
    # random per-sample patch permutation
    noise = jax.random.uniform(kr, (B, cfg["num_patches"]))
    ids_shuffle = jnp.argsort(noise, axis=1)
    ids_restore = jnp.argsort(ids_shuffle, axis=1).astype(jnp.int32)
    # noised pixels (NCHW, PyTorch conv convention)
    noised_pixel_values = jax.random.normal(
        kn, (B, cfg["num_channels"], cfg["image_size"], cfg["image_size"]),
        jnp.float32)

    fwd = jax.jit(functools.partial(decoder_forward, lengths=lengths, cfg=cfg))
    out = fwd(params, hidden_states, ids_restore, noised_pixel_values)
    logits = jax.block_until_ready(out["logits"])

    assert logits.shape == (B, cfg["num_patches"],
                            cfg["patch_size"] ** 2 * cfg["num_channels"])
    assert bool(jnp.all(jnp.isfinite(logits)))
    print("KERNEL_OK")
</pallas_src>

<mosaic_0001>
module attributes {stable_mosaic.version = 11 : i64} {
  func.func @_matmul_kernel(%arg0: i32, %arg1: i32, %arg2: i32, %arg3: memref<64x48xf32, #tpu.memory_space<vmem>>, %arg4: memref<48x32xf32, #tpu.memory_space<vmem>>, %arg5: memref<1x32xf32, #tpu.memory_space<vmem>>, %arg6: memref<64x32xf32, #tpu.memory_space<vmem>>, %arg7: memref<64x32xf32, #tpu.memory_space<vmem>>) attributes {dimension_semantics = [#tpu.dimension_semantics<parallel>, #tpu.dimension_semantics<parallel>, #tpu.dimension_semantics<arbitrary>], iteration_bounds = array<i64: 1, 1, 1>, scalar_prefetch = 0 : i64, scratch_operands = 1 : i64, tpu.core_type = #tpu.core_type<tc>, window_params = [{transform_indices = @transform_0, window_bounds = array<i64: 64, 48>}, {transform_indices = @transform_1, window_bounds = array<i64: 48, 32>}, {transform_indices = @transform_2, window_bounds = array<i64: 1, 32>}, {transform_indices = @transform_3, window_bounds = array<i64: 64, 32>}]} {
    %c0_i32 = arith.constant 0 : i32
    %0 = arith.cmpi eq, %arg2, %c0_i32 : i32
    %1 = arith.extui %0 : i1 to i32
    %c0_i32_0 = arith.constant 0 : i32
    %2 = arith.cmpi ne, %1, %c0_i32_0 : i32
    scf.if %2 {
      %cst_10 = arith.constant 0.000000e+00 : f32
      %12 = vector.broadcast %cst_10 : f32 to vector<64x32xf32>
      %c0_11 = arith.constant 0 : index
      %c0_12 = arith.constant 0 : index
      %13 = vector.load %arg7[%c0_11, %c0_12] : memref<64x32xf32, #tpu.memory_space<vmem>>, vector<64x32xf32>
      tpu.vector_store %arg7[%c0_11, %c0_12], %12 {strides = array<i32>} : memref<64x32xf32, #tpu.memory_space<vmem>>, vector<64x32xf32>,
    } else {
    }
    %c0 = arith.constant 0 : index
    %c0_1 = arith.constant 0 : index
    %3 = vector.load %arg7[%c0, %c0_1] : memref<64x32xf32, #tpu.memory_space<vmem>>, vector<64x32xf32>
    %c0_2 = arith.constant 0 : index
    %c0_3 = arith.constant 0 : index
    %4 = vector.load %arg3[%c0_2, %c0_3] : memref<64x48xf32, #tpu.memory_space<vmem>>, vector<64x48xf32>
    %c0_4 = arith.constant 0 : index
    %c0_5 = arith.constant 0 : index
    %5 = vector.load %arg4[%c0_4, %c0_5] : memref<48x32xf32, #tpu.memory_space<vmem>>, vector<48x32xf32>
    %cst = arith.constant dense<0.000000e+00> : vector<64x32xf32>
    %6 = tpu.matmul %4, %5, %cst {dimension_numbers = #tpu.dot_dimension_numbers<[1], [0], [0], [1], [0, 0, 1, 1], [], []>} : vector<64x48xf32>, vector<48x32xf32>, vector<64x32xf32> -> vector<64x32xf32>
    %7 = arith.addf %3, %6 : vector<64x32xf32>
    %c0_6 = arith.constant 0 : index
    %c0_7 = arith.constant 0 : index
    %8 = vector.load %arg7[%c0_6, %c0_7] : memref<64x32xf32, #tpu.memory_space<vmem>>, vector<64x32xf32>
    tpu.vector_store %arg7[%c0_6, %c0_7], %7 {strides = array<i32>} : memref<64x32xf32, #tpu.memory_space<vmem>>, vector<64x32xf32>,
    %c0_i32_8 = arith.constant 0 : i32
    %9 = arith.cmpi eq, %arg2, %c0_i32_8 : i32
    %10 = arith.extui %9 : i1 to i32
    %c0_i32_9 = arith.constant 0 : i32
    %11 = arith.cmpi ne, %10, %c0_i32_9 : i32
    scf.if %11 {
      %c0_10 = arith.constant 0 : index
      %c0_11 = arith.constant 0 : index
      %12 = vector.load %arg7[%c0_10, %c0_11] : memref<64x32xf32, #tpu.memory_space<vmem>>, vector<64x32xf32>
      %c0_12 = arith.constant 0 : index
      %c0_13 = arith.constant 0 : index
      %13 = vector.load %arg5[%c0_12, %c0_13] : memref<1x32xf32, #tpu.memory_space<vmem>>, vector<1x32xf32>
      %14 = vector.broadcast %13 : vector<1x32xf32> to vector<64x32xf32>
      %15 = arith.addf %12, %14 : vector<64x32xf32>
      %c0_14 = arith.constant 0 : index
      %c0_15 = arith.constant 0 : index
      %16 = vector.load %arg6[%c0_14, %c0_15] : memref<64x32xf32, #tpu.memory_space<vmem>>, vector<64x32xf32>
      tpu.vector_store %arg6[%c0_14, %c0_15], %15 {strides = array<i32>} : memref<64x32xf32, #tpu.memory_space<vmem>>, vector<64x32xf32>,
    } else {
    }
    return
  }
  func.func @transform_0(%arg0: i32, %arg1: i32, %arg2: i32) -> (i32, i32) {
    %c0_i32 = arith.constant 0 : i32
    return %arg0, %arg2 : i32, i32
  }
  func.func @transform_1(%arg0: i32, %arg1: i32, %arg2: i32) -> (i32, i32) {
    %c0_i32 = arith.constant 0 : i32
    return %arg2, %arg1 : i32, i32
  }
  func.func @transform_2(%arg0: i32, %arg1: i32, %arg2: i32) -> (i32, i32) {
    %c0_i32 = arith.constant 0 : i32
    %c0_i32_0 = arith.constant 0 : i32
    return %c0_i32, %arg1 : i32, i32
  }
  func.func @transform_3(%arg0: i32, %arg1: i32, %arg2: i32) -> (i32, i32) {
    %c0_i32 = arith.constant 0 : i32
    return %arg0, %arg1 : i32, i32
  }
}

module attributes {stable_mosaic.version = 11 : i64} {
  func.func @_matmul_kernel(%arg0: i32, %arg1: i32, %arg2: i32, %arg3: memref<20x32xf32, #tpu.memory_space<vmem>>, %arg4: memref<32x32xf32, #tpu.memory_space<vmem>>, %arg5: memref<1x32xf32, #tpu.memory_space<vmem>>, %arg6: memref<20x32xf32, #tpu.memory_space<vmem>>, %arg7: memref<20x32xf32, #tpu.memory_space<vmem>>) attributes {dimension_semantics = [#tpu.dimension_semantics<parallel>, #tpu.dimension_semantics<parallel>, #tpu.dimension_semantics<arbitrary>], iteration_bounds = array<i64: 1, 1, 1>, scalar_prefetch = 0 : i64, scratch_operands = 1 : i64, tpu.core_type = #tpu.core_type<tc>, window_params = [{transform_indices = @transform_0, window_bounds = array<i64: 20, 32>}, {transform_indices = @transform_1, window_bounds = array<i64: 32, 32>}, {transform_indices = @transform_2, window_bounds = array<i64: 1, 32>}, {transform_indices = @transform_3, window_bounds = array<i64: 20, 32>}]} {
    %c0_i32 = arith.constant 0 : i32
    %0 = arith.cmpi eq, %arg2, %c0_i32 : i32
    %1 = arith.extui %0 : i1 to i32
    %c0_i32_0 = arith.constant 0 : i32
    %2 = arith.cmpi ne, %1, %c0_i32_0 : i32
    scf.if %2 {
      %cst_10 = arith.constant 0.000000e+00 : f32
      %12 = vector.broadcast %cst_10 : f32 to vector<20x32xf32>
      %c0_11 = arith.constant 0 : index
      %c0_12 = arith.constant 0 : index
      %13 = vector.load %arg7[%c0_11, %c0_12] : memref<20x32xf32, #tpu.memory_space<vmem>>, vector<20x32xf32>
      tpu.vector_store %arg7[%c0_11, %c0_12], %12 {strides = array<i32>} : memref<20x32xf32, #tpu.memory_space<vmem>>, vector<20x32xf32>,
    } else {
    }
    %c0 = arith.constant 0 : index
    %c0_1 = arith.constant 0 : index
    %3 = vector.load %arg7[%c0, %c0_1] : memref<20x32xf32, #tpu.memory_space<vmem>>, vector<20x32xf32>
    %c0_2 = arith.constant 0 : index
    %c0_3 = arith.constant 0 : index
    %4 = vector.load %arg3[%c0_2, %c0_3] : memref<20x32xf32, #tpu.memory_space<vmem>>, vector<20x32xf32>
    %c0_4 = arith.constant 0 : index
    %c0_5 = arith.constant 0 : index
    %5 = vector.load %arg4[%c0_4, %c0_5] : memref<32x32xf32, #tpu.memory_space<vmem>>, vector<32x32xf32>
    %cst = arith.constant dense<0.000000e+00> : vector<20x32xf32>
    %6 = tpu.matmul %4, %5, %cst {dimension_numbers = #tpu.dot_dimension_numbers<[1], [0], [0], [1], [0, 0, 1, 1], [], []>} : vector<20x32xf32>, vector<32x32xf32>, vector<20x32xf32> -> vector<20x32xf32>
    %7 = arith.addf %3, %6 : vector<20x32xf32>
    %c0_6 = arith.constant 0 : index
    %c0_7 = arith.constant 0 : index
    %8 = vector.load %arg7[%c0_6, %c0_7] : memref<20x32xf32, #tpu.memory_space<vmem>>, vector<20x32xf32>
    tpu.vector_store %arg7[%c0_6, %c0_7], %7 {strides = array<i32>} : memref<20x32xf32, #tpu.memory_space<vmem>>, vector<20x32xf32>,
    %c0_i32_8 = arith.constant 0 : i32
    %9 = arith.cmpi eq, %arg2, %c0_i32_8 : i32
    %10 = arith.extui %9 : i1 to i32
    %c0_i32_9 = arith.constant 0 : i32
    %11 = arith.cmpi ne, %10, %c0_i32_9 : i32
    scf.if %11 {
      %c0_10 = arith.constant 0 : index
      %c0_11 = arith.constant 0 : index
      %12 = vector.load %arg7[%c0_10, %c0_11] : memref<20x32xf32, #tpu.memory_space<vmem>>, vector<20x32xf32>
      %c0_12 = arith.constant 0 : index
      %c0_13 = arith.constant 0 : index
      %13 = vector.load %arg5[%c0_12, %c0_13] : memref<1x32xf32, #tpu.memory_space<vmem>>, vector<1x32xf32>
      %14 = vector.broadcast %13 : vector<1x32xf32> to vector<20x32xf32>
      %15 = arith.addf %12, %14 : vector<20x32xf32>
      %c0_14 = arith.constant 0 : index
      %c0_15 = arith.constant 0 : index
      %16 = vector.load %arg6[%c0_14, %c0_15] : memref<20x32xf32, #tpu.memory_space<vmem>>, vector<20x32xf32>
      tpu.vector_store %arg6[%c0_14, %c0_15], %15 {strides = array<i32>} : memref<20x32xf32, #tpu.memory_space<vmem>>, vector<20x32xf32>,
    } else {
    }
    return
  }
  func.func @transform_0(%arg0: i32, %arg1: i32, %arg2: i32) -> (i32, i32) {
    %c0_i32 = arith.constant 0 : i32
    return %arg0, %arg2 : i32, i32
  }
  func.func @transform_1(%arg0: i32, %arg1: i32, %arg2: i32) -> (i32, i32) {
    %c0_i32 = arith.constant 0 : i32
    return %arg2, %arg1 : i32, i32
  }
  func.func @transform_2(%arg0: i32, %arg1: i32, %arg2: i32) -> (i32, i32) {
    %c0_i32 = arith.constant 0 : i32
    %c0_i32_0 = arith.constant 0 : i32
    return %c0_i32, %arg1 : i32, i32
  }
  func.func @transform_3(%arg0: i32, %arg1: i32, %arg2: i32) -> (i32, i32) {
    %c0_i32 = arith.constant 0 : i32
    return %arg0, %arg1 : i32, i32
  }
}

module attributes {stable_mosaic.version = 11 : i64} {
  func.func @_bottleneck_layer_kernel(%arg0: i32, %arg1: memref<1x1x32xf32, #tpu.memory_space<vmem>>, %arg2: memref<1x17x32xf32, #tpu.memory_space<vmem>>, %arg3: memref<1x32xf32, #tpu.memory_space<vmem>>, %arg4: memref<1x32xf32, #tpu.memory_space<vmem>>, %arg5: memref<32x96xf32, #tpu.memory_space<vmem>>, %arg6: memref<1x96xf32, #tpu.memory_space<vmem>>, %arg7: memref<32x32xf32, #tpu.memory_space<vmem>>, %arg8: memref<1x32xf32, #tpu.memory_space<vmem>>, %arg9: memref<1x32xf32, #tpu.memory_space<vmem>>, %arg10: memref<1x32xf32, #tpu.memory_space<vmem>>, %arg11: memref<32x64xf32, #tpu.memory_space<vmem>>, %arg12: memref<1x64xf32, #tpu.memory_space<vmem>>, %arg13: memref<64x32xf32, #tpu.memory_space<vmem>>, %arg14: memref<1x32xf32, #tpu.memory_space<vmem>>, %arg15: memref<1x17x32xf32, #tpu.memory_space<vmem>>) attributes {dimension_semantics = [#tpu.dimension_semantics<parallel>], iteration_bounds = array<i64: 4>, scalar_prefetch = 0 : i64, scratch_operands = 0 : i64, tpu.core_type = #tpu.core_type<tc>, window_params = [{transform_indices = @transform_0, window_bounds = array<i64: 1, 1, 32>}, {transform_indices = @transform_1, window_bounds = array<i64: 1, 17, 32>}, {pipeline_mode = #tpu.pipeline_mode<synchronous>, transform_indices = @transform_2, window_bounds = array<i64: 1, 32>}, {pipeline_mode = #tpu.pipeline_mode<synchronous>, transform_indices = @transform_3, window_bounds = array<i64: 1, 32>}, {pipeline_mode = #tpu.pipeline_mode<synchronous>, transform_indices = @transform_4, window_bounds = array<i64: 32, 96>}, {pipeline_mode = #tpu.pipeline_mode<synchronous>, transform_indices = @transform_5, window_bounds = array<i64: 1, 96>}, {pipeline_mode = #tpu.pipeline_mode<synchronous>, transform_indices = @transform_6, window_bounds = array<i64: 32, 32>}, {pipeline_mode = #tpu.pipeline_mode<synchronous>, transform_indices = @transform_7, window_bounds = array<i64: 1, 32>}, {pipeline_mode = #tpu.pipeline_mode<synchronous>, transform_indices = @transform_8, window_bounds = array<i64: 1, 32>}, {pipeline_mode = #tpu.pipeline_mode<synchronous>, transform_indices = @transform_9, window_bounds = array<i64: 1, 32>}, {pipeline_mode = #tpu.pipeline_mode<synchronous>, transform_indices = @transform_10, window_bounds = array<i64: 32, 64>}, {pipeline_mode = #tpu.pipeline_mode<synchronous>, transform_indices = @transform_11, window_bounds = array<i64: 1, 64>}, {pipeline_mode = #tpu.pipeline_mode<synchronous>, transform_indices = @transform_12, window_bounds = array<i64: 64, 32>}, {pipeline_mode = #tpu.pipeline_mode<synchronous>, transform_indices = @transform_13, window_bounds = array<i64: 1, 32>}, {transform_indices = @transform_14, window_bounds = array<i64: 1, 17, 32>}]} {
    %c0 = arith.constant 0 : index
    %c0_0 = arith.constant 0 : index
    %c0_1 = arith.constant 0 : index
    %0 = vector.load %arg2[%c0, %c0_0, %c0_1] : memref<1x17x32xf32, #tpu.memory_space<vmem>>, vector<1x17x32xf32>
    %1 = vector.shape_cast %0 : vector<1x17x32xf32> to vector<17x32xf32>
    %c0_2 = arith.constant 0 : index
    %c0_3 = arith.constant 0 : index
    %c0_4 = arith.constant 0 : index
    %2 = vector.load %arg1[%c0_2, %c0_3, %c0_4] : memref<1x1x32xf32, #tpu.memory_space<vmem>>, vector<1x1x32xf32>
    %3 = vector.shape_cast %2 : vector<1x1x32xf32> to vector<1x32xf32>
    %4 = tpu.iota {dimensions = array<i32: 0>} : vector<17x32xi32>
    %c0_i32 = arith.constant 0 : i32
    %5 = vector.broadcast %c0_i32 : i32 to vector<17x32xi32>
    %6 = arith.cmpi eq, %4, %5 : vector<17x32xi32>
    %7 = vector.shape_cast %3 : vector<1x32xf32> to vector<1x32xf32>
    %8 = vector.broadcast %7 : vector<1x32xf32> to vector<17x32xf32>
    %9 = arith.select %6, %8, %1 : vector<17x32xi1>, vector<17x32xf32>
    %c0_5 = arith.constant 0 : index
    %c0_6 = arith.constant 0 : index
    %10 = vector.load %arg3[%c0_5, %c0_6] : memref<1x32xf32, #tpu.memory_space<vmem>>, vector<1x32xf32>
    %c0_7 = arith.constant 0 : index
    %c0_8 = arith.constant 0 : index
    %11 = vector.load %arg4[%c0_7, %c0_8] : memref<1x32xf32, #tpu.memory_space<vmem>>, vector<1x32xf32>
    %cst = arith.constant dense<0.000000e+00> : vector<17xf32>
    %12 = vector.multi_reduction <add>, %9, %cst [1] : vector<17x32xf32> to vector<17xf32>
    %13 = vector.shape_cast %12 : vector<17xf32> to vector<17x1xf32>
    %cst_9 = arith.constant 3.200000e+01 : f32
    %14 = vector.broadcast %cst_9 : f32 to vector<17x1xf32>
    %15 = arith.divf %13, %14 : vector<17x1xf32>
    %16 = vector.broadcast %15 : vector<17x1xf32> to vector<17x32xf32>
    %17 = arith.subf %9, %16 : vector<17x32xf32>
    %18 = arith.mulf %17, %17 : vector<17x32xf32>
    %cst_10 = arith.constant dense<0.000000e+00> : vector<17xf32>
    %19 = vector.multi_reduction <add>, %18, %cst_10 [1] : vector<17x32xf32> to vector<17xf32>
    %20 = vector.shape_cast %19 : vector<17xf32> to vector<17x1xf32>
    %cst_11 = arith.constant 3.200000e+01 : f32
    %21 = vector.broadcast %cst_11 : f32 to vector<17x1xf32>
    %22 = arith.divf %20, %21 : vector<17x1xf32>
    %23 = vector.broadcast %15 : vector<17x1xf32> to vector<17x32xf32>
    %24 = arith.subf %9, %23 : vector<17x32xf32>
    %cst_12 = arith.constant 9.99999996E-13 : f32
    %25 = vector.broadcast %cst_12 : f32 to vector<17x1xf32>
    %26 = arith.addf %22, %25 : vector<17x1xf32>
    %27 = math.rsqrt %26 : vector<17x1xf32>
    %28 = vector.broadcast %27 : vector<17x1xf32> to vector<17x32xf32>
    %29 = arith.mulf %24, %28 : vector<17x32xf32>
    %30 = vector.broadcast %10 : vector<1x32xf32> to vector<17x32xf32>
    %31 = arith.mulf %29, %30 : vector<17x32xf32>
    %32 = vector.broadcast %11 : vector<1x32xf32> to vector<17x32xf32>
    %33 = arith.addf %31, %32 : vector<17x32xf32>
    %c0_13 = arith.constant 0 : index
    %c0_14 = arith.constant 0 : index
    %34 = vector.load %arg5[%c0_13, %c0_14] : memref<32x96xf32, #tpu.memory_space<vmem>>, vector<32x96xf32>
    %cst_15 = arith.constant dense<0.000000e+00> : vector<17x96xf32>
    %35 = tpu.matmul %33, %34, %cst_15 {dimension_numbers = #tpu.dot_dimension_numbers<[1], [0], [0], [1], [0, 0, 1, 1], [], []>} : vector<17x32xf32>, vector<32x96xf32>, vector<17x96xf32> -> vector<17x96xf32>
    %c0_16 = arith.constant 0 : index
    %c0_17 = arith.constant 0 : index
    %36 = vector.load %arg6[%c0_16, %c0_17] : memref<1x96xf32, #tpu.memory_space<vmem>>, vector<1x96xf32>
    %37 = vector.broadcast %36 : vector<1x96xf32> to vector<17x96xf32>
    %38 = arith.addf %35, %37 : vector<17x96xf32>
    %39 = vector.extract_strided_slice %38 {offsets = [0, 0], sizes = [17, 32], strides = [1, 1]} : vector<17x96xf32> to vector<17x32xf32>
    %cst_18 = arith.constant 0.353553385 : f32
    %40 = vector.broadcast %cst_18 : f32 to vector<17x32xf32>
    %41 = arith.mulf %39, %40 : vector<17x32xf32>
    %42 = vector.extract_strided_slice %38 {offsets = [0, 32], sizes = [17, 32], strides = [1, 1]} : vector<17x96xf32> to vector<17x32xf32>
    %43 = vector.extract_strided_slice %38 {offsets = [0, 64], sizes = [17, 32], strides = [1, 1]} : vector<17x96xf32> to vector<17x32xf32>
    %44 = vector.extract_strided_slice %41 {offsets = [0, 0], sizes = [17, 8], strides = [1, 1]} : vector<17x32xf32> to vector<17x8xf32>
    %45 = vector.extract_strided_slice %42 {offsets = [0, 0], sizes = [17, 8], strides = [1, 1]} : vector<17x32xf32> to vector<17x8xf32>
    "tpu.trace_start"() <{level = 10 : i32, message = "qd,kd->qk"}> : () -> ()
    %cst_19 = arith.constant dense<0.000000e+00> : vector<17x17xf32>
    %46 = tpu.matmul %44, %45, %cst_19 {dimension_numbers = #tpu.dot_dimension_numbers<[1], [1], [0], [0], [0, 0, 1, 0], [], []>} : vector<17x8xf32>, vector<17x8xf32>, vector<17x17xf32> -> vector<17x17xf32>
    "tpu.trace_stop"() : () -> ()
    %cst_20 = arith.constant dense<0xFF800000> : vector<17xf32>
    %47 = vector.multi_reduction <maximumf>, %46, %cst_20 [1] : vector<17x17xf32> to vector<17xf32>
    %48 = vector.shape_cast %47 : vector<17xf32> to vector<17x1xf32>
    %49 = vector.broadcast %48 : vector<17x1xf32> to vector<17x17xf32>
    %50 = arith.subf %46, %49 : vector<17x17xf32>
    %51 = math.exp %50 : vector<17x17xf32>
    %cst_21 = arith.constant dense<0.000000e+00> : vector<17xf32>
    %52 = vector.multi_reduction <add>, %51, %cst_21 [1] : vector<17x17xf32> to vector<17xf32>
    %53 = vector.shape_cast %52 : vector<17xf32> to vector<17x1xf32>
    %54 = vector.extract_strided_slice %43 {offsets = [0, 0], sizes = [17, 8], strides = [1, 1]} : vector<17x32xf32> to vector<17x8xf32>
    %cst_22 = arith.constant dense<0.000000e+00> : vector<17x8xf32>
    %55 = tpu.matmul %51, %54, %cst_22 {dimension_numbers = #tpu.dot_dimension_numbers<[1], [0], [0], [1], [0, 0, 1, 1], [], []>} : vector<17x17xf32>, vector<17x8xf32>, vector<17x8xf32> -> vector<17x8xf32>
    %56 = tpu.reciprocal %53 : vector<17x1xf32> -> vector<17x1xf32>
    %57 = vector.broadcast %56 : vector<17x1xf32> to vector<17x8xf32>
    %58 = arith.mulf %55, %57 : vector<17x8xf32>
    %59 = vector.extract_strided_slice %41 {offsets = [0, 8], sizes = [17, 8], strides = [1, 1]} : vector<17x32xf32> to vector<17x8xf32>
    %60 = vector.extract_strided_slice %42 {offsets = [0, 8], sizes = [17, 8], strides = [1, 1]} : vector<17x32xf32> to vector<17x8xf32>
    "tpu.trace_start"() <{level = 10 : i32, message = "qd,kd->qk"}> : () -> ()
    %cst_23 = arith.constant dense<0.000000e+00> : vector<17x17xf32>
    %61 = tpu.matmul %59, %60, %cst_23 {dimension_numbers = #tpu.dot_dimension_numbers<[1], [1], [0], [0], [0, 0, 1, 0], [], []>} : vector<17x8xf32>, vector<17x8xf32>, vector<17x17xf32> -> vector<17x17xf32>
    "tpu.trace_stop"() : () -> ()
    %cst_24 = arith.constant dense<0xFF800000> : vector<17xf32>
    %62 = vector.multi_reduction <maximumf>, %61, %cst_24 [1] : vector<17x17xf32> to vector<17xf32>
    %63 = vector.shape_cast %62 : vector<17xf32> to vector<17x1xf32>
    %64 = vector.broadcast %63 : vector<17x1xf32> to vector<17x17xf32>
    %65 = arith.subf %61, %64 : vector<17x17xf32>
    %66 = math.exp %65 : vector<17x17xf32>
    %cst_25 = arith.constant dense<0.000000e+00> : vector<17xf32>
    %67 = vector.multi_reduction <add>, %66, %cst_25 [1] : vector<17x17xf32> to vector<17xf32>
    %68 = vector.shape_cast %67 : vector<17xf32> to vector<17x1xf32>
    %69 = vector.extract_strided_slice %43 {offsets = [0, 8], sizes = [17, 8], strides = [1, 1]} : vector<17x32xf32> to vector<17x8xf32>
    %cst_26 = arith.constant dense<0.000000e+00> : vector<17x8xf32>
    %70 = tpu.matmul %66, %69, %cst_26 {dimension_numbers = #tpu.dot_dimension_numbers<[1], [0], [0], [1], [0, 0, 1, 1], [], []>} : vector<17x17xf32>, vector<17x8xf32>, vector<17x8xf32> -> vector<17x8xf32>
    %71 = tpu.reciprocal %68 : vector<17x1xf32> -> vector<17x1xf32>
    %72 = vector.broadcast %71 : vector<17x1xf32> to vector<17x8xf32>
    %73 = arith.mulf %70, %72 : vector<17x8xf32>
    %74 = vector.extract_strided_slice %41 {offsets = [0, 16], sizes = [17, 8], strides = [1, 1]} : vector<17x32xf32> to vector<17x8xf32>
    %75 = vector.extract_strided_slice %42 {offsets = [0, 16], sizes = [17, 8], strides = [1, 1]} : vector<17x32xf32> to vector<17x8xf32>
    "tpu.trace_start"() <{level = 10 : i32, message = "qd,kd->qk"}> : () -> ()
    %cst_27 = arith.constant dense<0.000000e+00> : vector<17x17xf32>
    %76 = tpu.matmul %74, %75, %cst_27 {dimension_numbers = #tpu.dot_dimension_numbers<[1], [1], [0], [0], [0, 0, 1, 0], [], []>} : vector<17x8xf32>, vector<17x8xf32>, vector<17x17xf32> -> vector<17x17xf32>
    "tpu.trace_stop"() : () -> ()
    %cst_28 = arith.constant dense<0xFF800000> : vector<17xf32>
    %77 = vector.multi_reduction <maximumf>, %76, %cst_28 [1] : vector<17x17xf32> to vector<17xf32>
    %78 = vector.shape_cast %77 : vector<17xf32> to vector<17x1xf32>
    %79 = vector.broadcast %78 : vector<17x1xf32> to vector<17x17xf32>
    %80 = arith.subf %76, %79 : vector<17x17xf32>
    %81 = math.exp %80 : vector<17x17xf32>
    %cst_29 = arith.constant dense<0.000000e+00> : vector<17xf32>
    %82 = vector.multi_reduction <add>, %81, %cst_29 [1] : vector<17x17xf32> to vector<17xf32>
    %83 = vector.shape_cast %82 : vector<17xf32> to vector<17x1xf32>
    %84 = vector.extract_strided_slice %43 {offsets = [0, 16], sizes = [17, 8], strides = [1, 1]} : vector<17x32xf32> to vector<17x8xf32>
    %cst_30 = arith.constant dense<0.000000e+00> : vector<17x8xf32>
    %85 = tpu.matmul %81, %84, %cst_30 {dimension_numbers = #tpu.dot_dimension_numbers<[1], [0], [0], [1], [0, 0, 1, 1], [], []>} : vector<17x17xf32>, vector<17x8xf32>, vector<17x8xf32> -> vector<17x8xf32>
    %86 = tpu.reciprocal %83 : vector<17x1xf32> -> vector<17x1xf32>
    %87 = vector.broadcast %86 : vector<17x1xf32> to vector<17x8xf32>
    %88 = arith.mulf %85, %87 : vector<17x8xf32>
    %89 = vector.extract_strided_slice %41 {offsets = [0, 24], sizes = [17, 8], strides = [1, 1]} : vector<17x32xf32> to vector<17x8xf32>
    %90 = vector.extract_strided_slice %42 {offsets = [0, 24], sizes = [17, 8], strides = [1, 1]} : vector<17x32xf32> to vector<17x8xf32>
    "tpu.trace_start"() <{level = 10 : i32, message = "qd,kd->qk"}> : () -> ()
    %cst_31 = arith.constant dense<0.000000e+00> : vector<17x17xf32>
    %91 = tpu.matmul %89, %90, %cst_31 {dimension_numbers = #tpu.dot_dimension_numbers<[1], [1], [0], [0], [0, 0, 1, 0], [], []>} : vector<17x8xf32>, vector<17x8xf32>, vector<17x17xf32> -> vector<17x17xf32>
    "tpu.trace_stop"() : () -> ()
    %cst_32 = arith.constant dense<0xFF800000> : vector<17xf32>
    %92 = vector.multi_reduction <maximumf>, %91, %cst_32 [1] : vector<17x17xf32> to vector<17xf32>
    %93 = vector.shape_cast %92 : vector<17xf32> to vector<17x1xf32>
    %94 = vector.broadcast %93 : vector<17x1xf32> to vector<17x17xf32>
    %95 = arith.subf %91, %94 : vector<17x17xf32>
    %96 = math.exp %95 : vector<17x17xf32>
    %cst_33 = arith.constant dense<0.000000e+00> : vector<17xf32>
    %97 = vector.multi_reduction <add>, %96, %cst_33 [1] : vector<17x17xf32> to vector<17xf32>
    %98 = vector.shape_cast %97 : vector<17xf32> to vector<17x1xf32>
    %99 = vector.extract_strided_slice %43 {offsets = [0, 24], sizes = [17, 8], strides = [1, 1]} : vector<17x32xf32> to vector<17x8xf32>
    %cst_34 = arith.constant dense<0.000000e+00> : vector<17x8xf32>
    %100 = tpu.matmul %96, %99, %cst_34 {dimension_numbers = #tpu.dot_dimension_numbers<[1], [0], [0], [1], [0, 0, 1, 1], [], []>} : vector<17x17xf32>, vector<17x8xf32>, vector<17x8xf32> -> vector<17x8xf32>
    %101 = tpu.reciprocal %98 : vector<17x1xf32> -> vector<17x1xf32>
    %102 = vector.broadcast %101 : vector<17x1xf32> to vector<17x8xf32>
    %103 = arith.mulf %100, %102 : vector<17x8xf32>
    %104 = tpu.concatenate %58, %73, %88, %103 in 1 : vector<17x8xf32>, vector<17x8xf32>, vector<17x8xf32>, vector<17x8xf32> -> vector<17x32xf32>
    %c0_35 = arith.constant 0 : index
    %c0_36 = arith.constant 0 : index
    %105 = vector.load %arg7[%c0_35, %c0_36] : memref<32x32xf32, #tpu.memory_space<vmem>>, vector<32x32xf32>
    %cst_37 = arith.constant dense<0.000000e+00> : vector<17x32xf32>
    %106 = tpu.matmul %104, %105, %cst_37 {dimension_numbers = #tpu.dot_dimension_numbers<[1], [0], [0], [1], [0, 0, 1, 1], [], []>} : vector<17x32xf32>, vector<32x32xf32>, vector<17x32xf32> -> vector<17x32xf32>
    %c0_38 = arith.constant 0 : index
    %c0_39 = arith.constant 0 : index
    %107 = vector.load %arg8[%c0_38, %c0_39] : memref<1x32xf32, #tpu.memory_space<vmem>>, vector<1x32xf32>
    %108 = vector.broadcast %107 : vector<1x32xf32> to vector<17x32xf32>
    %109 = arith.addf %106, %108 : vector<17x32xf32>
    %110 = arith.addf %109, %9 : vector<17x32xf32>
    %c0_40 = arith.constant 0 : index
    %c0_41 = arith.constant 0 : index
    %111 = vector.load %arg9[%c0_40, %c0_41] : memref<1x32xf32, #tpu.memory_space<vmem>>, vector<1x32xf32>
    %c0_42 = arith.constant 0 : index
    %c0_43 = arith.constant 0 : index
    %112 = vector.load %arg10[%c0_42, %c0_43] : memref<1x32xf32, #tpu.memory_space<vmem>>, vector<1x32xf32>
    %cst_44 = arith.constant dense<0.000000e+00> : vector<17xf32>
    %113 = vector.multi_reduction <add>, %110, %cst_44 [1] : vector<17x32xf32> to vector<17xf32>
    %114 = vector.shape_cast %113 : vector<17xf32> to vector<17x1xf32>
    %cst_45 = arith.constant 3.200000e+01 : f32
    %115 = vector.broadcast %cst_45 : f32 to vector<17x1xf32>
    %116 = arith.divf %114, %115 : vector<17x1xf32>
    %117 = vector.broadcast %116 : vector<17x1xf32> to vector<17x32xf32>
    %118 = arith.subf %110, %117 : vector<17x32xf32>
    %119 = arith.mulf %118, %118 : vector<17x32xf32>
    %cst_46 = arith.constant dense<0.000000e+00> : vector<17xf32>
    %120 = vector.multi_reduction <add>, %119, %cst_46 [1] : vector<17x32xf32> to vector<17xf32>
    %121 = vector.shape_cast %120 : vector<17xf32> to vector<17x1xf32>
    %cst_47 = arith.constant 3.200000e+01 : f32
    %122 = vector.broadcast %cst_47 : f32 to vector<17x1xf32>
    %123 = arith.divf %121, %122 : vector<17x1xf32>
    %124 = vector.broadcast %116 : vector<17x1xf32> to vector<17x32xf32>
    %125 = arith.subf %110, %124 : vector<17x32xf32>
    %cst_48 = arith.constant 9.99999996E-13 : f32
    %126 = vector.broadcast %cst_48 : f32 to vector<17x1xf32>
    %127 = arith.addf %123, %126 : vector<17x1xf32>
    %128 = math.rsqrt %127 : vector<17x1xf32>
    %129 = vector.broadcast %128 : vector<17x1xf32> to vector<17x32xf32>
    %130 = arith.mulf %125, %129 : vector<17x32xf32>
    %131 = vector.broadcast %111 : vector<1x32xf32> to vector<17x32xf32>
    %132 = arith.mulf %130, %131 : vector<17x32xf32>
    %133 = vector.broadcast %112 : vector<1x32xf32> to vector<17x32xf32>
    %134 = arith.addf %132, %133 : vector<17x32xf32>
    %c0_49 = arith.constant 0 : index
    %c0_50 = arith.constant 0 : index
    %135 = vector.load %arg11[%c0_49, %c0_50] : memref<32x64xf32, #tpu.memory_space<vmem>>, vector<32x64xf32>
    %cst_51 = arith.constant dense<0.000000e+00> : vector<17x64xf32>
    %136 = tpu.matmul %134, %135, %cst_51 {dimension_numbers = #tpu.dot_dimension_numbers<[1], [0], [0], [1], [0, 0, 1, 1], [], []>} : vector<17x32xf32>, vector<32x64xf32>, vector<17x64xf32> -> vector<17x64xf32>
    %c0_52 = arith.constant 0 : index
    %c0_53 = arith.constant 0 : index
    %137 = vector.load %arg12[%c0_52, %c0_53] : memref<1x64xf32, #tpu.memory_space<vmem>>, vector<1x64xf32>
    %138 = vector.broadcast %137 : vector<1x64xf32> to vector<17x64xf32>
    %139 = arith.addf %136, %138 : vector<17x64xf32>
    %cst_54 = arith.constant 5.000000e-01 : f32
    %140 = vector.broadcast %cst_54 : f32 to vector<17x64xf32>
    %141 = arith.mulf %140, %139 : vector<17x64xf32>
    %cst_55 = arith.constant 0.707106769 : f32
    %142 = vector.broadcast %cst_55 : f32 to vector<17x64xf32>
    %143 = arith.mulf %139, %142 : vector<17x64xf32>
    %144 = math.erf %143 : vector<17x64xf32>
    %cst_56 = arith.constant 1.000000e+00 : f32
    %145 = vector.broadcast %cst_56 : f32 to vector<17x64xf32>
    %146 = arith.addf %145, %144 : vector<17x64xf32>
    %147 = arith.mulf %141, %146 : vector<17x64xf32>
    %c0_57 = arith.constant 0 : index
    %c0_58 = arith.constant 0 : index
    %148 = vector.load %arg13[%c0_57, %c0_58] : memref<64x32xf32, #tpu.memory_space<vmem>>, vector<64x32xf32>
    %cst_59 = arith.constant dense<0.000000e+00> : vector<17x32xf32>
    %149 = tpu.matmul %147, %148, %cst_59 {dimension_numbers = #tpu.dot_dimension_numbers<[1], [0], [0], [1], [0, 0, 1, 1], [], []>} : vector<17x64xf32>, vector<64x32xf32>, vector<17x32xf32> -> vector<17x32xf32>
    %c0_60 = arith.constant 0 : index
    %c0_61 = arith.constant 0 : index
    %150 = vector.load %arg14[%c0_60, %c0_61] : memref<1x32xf32, #tpu.memory_space<vmem>>, vector<1x32xf32>
    %151 = vector.broadcast %150 : vector<1x32xf32> to vector<17x32xf32>
    %152 = arith.addf %149, %151 : vector<17x32xf32>
    %153 = arith.addf %152, %110 : vector<17x32xf32>
    %c0_62 = arith.constant 0 : index
    %c0_63 = arith.constant 0 : index
    %c0_64 = arith.constant 0 : index
    %154 = vector.load %arg15[%c0_62, %c0_63, %c0_64] : memref<1x17x32xf32, #tpu.memory_space<vmem>>, vector<1x17x32xf32>
    %155 = vector.shape_cast %154 : vector<1x17x32xf32> to vector<17x32xf32>
    %156 = vector.shape_cast %153 : vector<17x32xf32> to vector<1x17x32xf32>
    tpu.vector_store %arg15[%c0_62, %c0_63, %c0_64], %156 {strides = array<i32>} : memref<1x17x32xf32, #tpu.memory_space<vmem>>, vector<1x17x32xf32>,
    return
  }
  func.func @transform_0(%arg0: i32) -> (i32, i32, i32) {
    %c0_i32 = arith.constant 0 : i32
    %c0_i32_0 = arith.constant 0 : i32
    %c0_i32_1 = arith.constant 0 : i32
    return %arg0, %c0_i32, %c0_i32_0 : i32, i32, i32
  }
  func.func @transform_1(%arg0: i32) -> (i32, i32, i32) {
    %c0_i32 = arith.constant 0 : i32
    %c0_i32_0 = arith.constant 0 : i32
    %c0_i32_1 = arith.constant 0 : i32
    return %arg0, %c0_i32, %c0_i32_0 : i32, i32, i32
  }
  func.func @transform_2(%arg0: i32) -> (i32, i32) {
    %c0_i32 = arith.constant 0 : i32
    %c0_i32_0 = arith.constant 0 : i32
    %c0_i32_1 = arith.constant 0 : i32
    return %c0_i32, %c0_i32_0 : i32, i32
  }
  func.func @transform_3(%arg0: i32) -> (i32, i32) {
    %c0_i32 = arith.constant 0 : i32
    %c0_i32_0 = arith.constant 0 : i32
    %c0_i32_1 = arith.constant 0 : i32
    return %c0_i32, %c0_i32_0 : i32, i32
  }
  func.func @transform_4(%arg0: i32) -> (i32, i32) {
    %c0_i32 = arith.constant 0 : i32
    %c0_i32_0 = arith.constant 0 : i32
    %c0_i32_1 = arith.constant 0 : i32
    return %c0_i32, %c0_i32_0 : i32, i32
  }
  func.func @transform_5(%arg0: i32) -> (i32, i32) {
    %c0_i32 = arith.constant 0 : i32
    %c0_i32_0 = arith.constant 0 : i32
    %c0_i32_1 = arith.constant 0 : i32
    return %c0_i32, %c0_i32_0 : i32, i32
  }
  func.func @transform_6(%arg0: i32) -> (i32, i32) {
    %c0_i32 = arith.constant 0 : i32
    %c0_i32_0 = arith.constant 0 : i32
    %c0_i32_1 = arith.constant 0 : i32
    return %c0_i32, %c0_i32_0 : i32, i32
  }
  func.func @transform_7(%arg0: i32) -> (i32, i32) {
    %c0_i32 = arith.constant 0 : i32
    %c0_i32_0 = arith.constant 0 : i32
    %c0_i32_1 = arith.constant 0 : i32
    return %c0_i32, %c0_i32_0 : i32, i32
  }
  func.func @transform_8(%arg0: i32) -> (i32, i32) {
    %c0_i32 = arith.constant 0 : i32
    %c0_i32_0 = arith.constant 0 : i32
    %c0_i32_1 = arith.constant 0 : i32
    return %c0_i32, %c0_i32_0 : i32, i32
  }
  func.func @transform_9(%arg0: i32) -> (i32, i32) {
    %c0_i32 = arith.constant 0 : i32
    %c0_i32_0 = arith.constant 0 : i32
    %c0_i32_1 = arith.constant 0 : i32
    return %c0_i32, %c0_i32_0 : i32, i32
  }
  func.func @transform_10(%arg0: i32) -> (i32, i32) {
    %c0_i32 = arith.constant 0 : i32
    %c0_i32_0 = arith.constant 0 : i32
    %c0_i32_1 = arith.constant 0 : i32
    return %c0_i32, %c0_i32_0 : i32, i32
  }
  func.func @transform_11(%arg0: i32) -> (i32, i32) {
    %c0_i32 = arith.constant 0 : i32
    %c0_i32_0 = arith.constant 0 : i32
    %c0_i32_1 = arith.constant 0 : i32
    return %c0_i32, %c0_i32_0 : i32, i32
  }
  func.func @transform_12(%arg0: i32) -> (i32, i32) {
    %c0_i32 = arith.constant 0 : i32
    %c0_i32_0 = arith.constant 0 : i32
    %c0_i32_1 = arith.constant 0 : i32
    return %c0_i32, %c0_i32_0 : i32, i32
  }
  func.func @transform_13(%arg0: i32) -> (i32, i32) {
    %c0_i32 = arith.constant 0 : i32
    %c0_i32_0 = arith.constant 0 : i32
    %c0_i32_1 = arith.constant 0 : i32
    return %c0_i32, %c0_i32_0 : i32, i32
  }
  func.func @transform_14(%arg0: i32) -> (i32, i32, i32) {
    %c0_i32 = arith.constant 0 : i32
    %c0_i32_0 = arith.constant 0 : i32
    %c0_i32_1 = arith.constant 0 : i32
    return %arg0, %c0_i32, %c0_i32_0 : i32, i32, i32
  }
}

module attributes {stable_mosaic.version = 11 : i64} {
  func.func @_norm_pred_kernel(%arg0: i32, %arg1: memref<1x17x32xf32, #tpu.memory_space<vmem>>, %arg2: memref<1x32xf32, #tpu.memory_space<vmem>>, %arg3: memref<1x32xf32, #tpu.memory_space<vmem>>, %arg4: memref<32x48xf32, #tpu.memory_space<vmem>>, %arg5: memref<1x48xf32, #tpu.memory_space<vmem>>, %arg6: memref<1x16x48xf32, #tpu.memory_space<vmem>>) attributes {dimension_semantics = [#tpu.dimension_semantics<parallel>], iteration_bounds = array<i64: 4>, scalar_prefetch = 0 : i64, scratch_operands = 0 : i64, tpu.core_type = #tpu.core_type<tc>, window_params = [{transform_indices = @transform_0, window_bounds = array<i64: 1, 17, 32>}, {pipeline_mode = #tpu.pipeline_mode<synchronous>, transform_indices = @transform_1, window_bounds = array<i64: 1, 32>}, {pipeline_mode = #tpu.pipeline_mode<synchronous>, transform_indices = @transform_2, window_bounds = array<i64: 1, 32>}, {pipeline_mode = #tpu.pipeline_mode<synchronous>, transform_indices = @transform_3, window_bounds = array<i64: 32, 48>}, {pipeline_mode = #tpu.pipeline_mode<synchronous>, transform_indices = @transform_4, window_bounds = array<i64: 1, 48>}, {transform_indices = @transform_5, window_bounds = array<i64: 1, 16, 48>}]} {
    %c0 = arith.constant 0 : index
    %c0_0 = arith.constant 0 : index
    %c0_1 = arith.constant 0 : index
    %0 = vector.load %arg1[%c0, %c0_0, %c0_1] : memref<1x17x32xf32, #tpu.memory_space<vmem>>, vector<1x17x32xf32>
    %1 = vector.shape_cast %0 : vector<1x17x32xf32> to vector<17x32xf32>
    %2 = vector.extract_strided_slice %1 {offsets = [1, 0], sizes = [16, 32], strides = [1, 1]} : vector<17x32xf32> to vector<16x32xf32>
    %cst = arith.constant dense<0.000000e+00> : vector<16xf32>
    %3 = vector.multi_reduction <add>, %2, %cst [1] : vector<16x32xf32> to vector<16xf32>
    %4 = vector.shape_cast %3 : vector<16xf32> to vector<16x1xf32>
    %cst_2 = arith.constant 3.200000e+01 : f32
    %5 = vector.broadcast %cst_2 : f32 to vector<16x1xf32>
    %6 = arith.divf %4, %5 : vector<16x1xf32>
    %7 = vector.broadcast %6 : vector<16x1xf32> to vector<16x32xf32>
    %8 = arith.subf %2, %7 : vector<16x32xf32>
    %9 = arith.mulf %8, %8 : vector<16x32xf32>
    %cst_3 = arith.constant dense<0.000000e+00> : vector<16xf32>
    %10 = vector.multi_reduction <add>, %9, %cst_3 [1] : vector<16x32xf32> to vector<16xf32>
    %11 = vector.shape_cast %10 : vector<16xf32> to vector<16x1xf32>
    %cst_4 = arith.constant 3.200000e+01 : f32
    %12 = vector.broadcast %cst_4 : f32 to vector<16x1xf32>
    %13 = arith.divf %11, %12 : vector<16x1xf32>
    %14 = vector.broadcast %6 : vector<16x1xf32> to vector<16x32xf32>
    %15 = arith.subf %2, %14 : vector<16x32xf32>
    %cst_5 = arith.constant 9.99999996E-13 : f32
    %16 = vector.broadcast %cst_5 : f32 to vector<16x1xf32>
    %17 = arith.addf %13, %16 : vector<16x1xf32>
    %18 = math.rsqrt %17 : vector<16x1xf32>
    %19 = vector.broadcast %18 : vector<16x1xf32> to vector<16x32xf32>
    %20 = arith.mulf %15, %19 : vector<16x32xf32>
    %c0_6 = arith.constant 0 : index
    %c0_7 = arith.constant 0 : index
    %21 = vector.load %arg2[%c0_6, %c0_7] : memref<1x32xf32, #tpu.memory_space<vmem>>, vector<1x32xf32>
    %22 = vector.broadcast %21 : vector<1x32xf32> to vector<16x32xf32>
    %23 = arith.mulf %20, %22 : vector<16x32xf32>
    %c0_8 = arith.constant 0 : index
    %c0_9 = arith.constant 0 : index
    %24 = vector.load %arg3[%c0_8, %c0_9] : memref<1x32xf32, #tpu.memory_space<vmem>>, vector<1x32xf32>
    %25 = vector.broadcast %24 : vector<1x32xf32> to vector<16x32xf32>
    %26 = arith.addf %23, %25 : vector<16x32xf32>
    %c0_10 = arith.constant 0 : index
    %c0_11 = arith.constant 0 : index
    %27 = vector.load %arg4[%c0_10, %c0_11] : memref<32x48xf32, #tpu.memory_space<vmem>>, vector<32x48xf32>
    %cst_12 = arith.constant dense<0.000000e+00> : vector<16x48xf32>
    %28 = tpu.matmul %26, %27, %cst_12 {dimension_numbers = #tpu.dot_dimension_numbers<[1], [0], [0], [1], [0, 0, 1, 1], [], []>} : vector<16x32xf32>, vector<32x48xf32>, vector<16x48xf32> -> vector<16x48xf32>
    %c0_13 = arith.constant 0 : index
    %c0_14 = arith.constant 0 : index
    %29 = vector.load %arg5[%c0_13, %c0_14] : memref<1x48xf32, #tpu.memory_space<vmem>>, vector<1x48xf32>
    %30 = vector.broadcast %29 : vector<1x48xf32> to vector<16x48xf32>
    %31 = arith.addf %28, %30 : vector<16x48xf32>
    %c0_15 = arith.constant 0 : index
    %c0_16 = arith.constant 0 : index
    %c0_17 = arith.constant 0 : index
    %32 = vector.load %arg6[%c0_15, %c0_16, %c0_17] : memref<1x16x48xf32, #tpu.memory_space<vmem>>, vector<1x16x48xf32>
    %33 = vector.shape_cast %32 : vector<1x16x48xf32> to vector<16x48xf32>
    %34 = vector.shape_cast %31 : vector<16x48xf32> to vector<1x16x48xf32>
    tpu.vector_store %arg6[%c0_15, %c0_16, %c0_17], %34 {strides = array<i32>} : memref<1x16x48xf32, #tpu.memory_space<vmem>>, vector<1x16x48xf32>,
    return
  }
  func.func @transform_0(%arg0: i32) -> (i32, i32, i32) {
    %c0_i32 = arith.constant 0 : i32
    %c0_i32_0 = arith.constant 0 : i32
    %c0_i32_1 = arith.constant 0 : i32
    return %arg0, %c0_i32, %c0_i32_0 : i32, i32, i32
  }
  func.func @transform_1(%arg0: i32) -> (i32, i32) {
    %c0_i32 = arith.constant 0 : i32
    %c0_i32_0 = arith.constant 0 : i32
    %c0_i32_1 = arith.constant 0 : i32
    return %c0_i32, %c0_i32_0 : i32, i32
  }
  func.func @transform_2(%arg0: i32) -> (i32, i32) {
    %c0_i32 = arith.constant 0 : i32
    %c0_i32_0 = arith.constant 0 : i32
    %c0_i32_1 = arith.constant 0 : i32
    return %c0_i32, %c0_i32_0 : i32, i32
  }
  func.func @transform_3(%arg0: i32) -> (i32, i32) {
    %c0_i32 = arith.constant 0 : i32
    %c0_i32_0 = arith.constant 0 : i32
    %c0_i32_1 = arith.constant 0 : i32
    return %c0_i32, %c0_i32_0 : i32, i32
  }
  func.func @transform_4(%arg0: i32) -> (i32, i32) {
    %c0_i32 = arith.constant 0 : i32
    %c0_i32_0 = arith.constant 0 : i32
    %c0_i32_1 = arith.constant 0 : i32
    return %c0_i32, %c0_i32_0 : i32, i32
  }
  func.func @transform_5(%arg0: i32) -> (i32, i32, i32) {
    %c0_i32 = arith.constant 0 : i32
    %c0_i32_0 = arith.constant 0 : i32
    %c0_i32_1 = arith.constant 0 : i32
    return %arg0, %c0_i32, %c0_i32_0 : i32, i32, i32
  }
}

</mosaic_0001>

<bundles_post_ra>
// kernel: decoder_forward.6
= control target key start
LH: loop header
LB: loop body
LE: loop exit
PB: predicated region body
PF: predicated region fallthrough
CT: control target
= control target key end

     0   :  { %vm18_vm0 = vcmask 261120   ;;  %v195_v2 = vmov 0.0   ;;  %vm49_vm1 = vcmask 392192   ;;  %s317_s1 = inlined_call_operand.vmem [shape: f32[48,32], index: 1, kind: input, shape index: {}]   ;;  %s318_s2 = inlined_call_operand.vmem [shape: f32[1,32], index: 2, kind: input, shape index: {}]   ;;  %s319_s0 = inlined_call_operand.vmem [shape: f32[64,48], index: 0, kind: input, shape index: {}]   ;;  %s320_s3 = inlined_call_operand.vmem [shape: f32[64,32], index: 3, kind: output, shape index: {}]  }
   0x1   :  { %v48_v0 = vld [vmem:[%s317_s1 + $0x28] sm:$0xff]  ;;  %v47_v1 = vld [vmem:[%s317_s1 + $0x20] sm:$0xff]  ;;  %19 = vst.msk [vmem:[#allocation2] sm:$0xff] %vm18_vm0, %v195_v2  ;;  %v46_v3 = vld [vmem:[%s317_s1 + $0x18] sm:$0xff] }
   0x2   :  { %176 = vmatpush.msra.mxu2 %v48_v0  ;;  %177 = vmatpush.msra.mxu3 %v48_v0  ;;  %20 = vst.msk [vmem:[#allocation2 + $0x8] sm:$0xff] %vm18_vm0, %v195_v2  ;;  %v45_v4 = vld [vmem:[%s317_s1 + $0x10] sm:$0xff]  ;;  %v44_v5 = vld [vmem:[%s317_s1 + $0x8] sm:$0xff]  ;;  %v43_v6 = vld [vmem:[%s317_s1] sm:$0xff] }
   0x3   :  { %84 = vmatpush.msra.mxu0 %v48_v0  ;;  %175 = vmatpush.msra.mxu1 %v48_v0  ;;  %21 = vst.msk [vmem:[#allocation2 + $0x10] sm:$0xff] %vm18_vm0, %v195_v2  ;;  %v39_v7 = vld [vmem:[%s319_s0 + $0x20] sm:$0xff]  ;;  %v41_v8 = vld [vmem:[%s319_s0 + $0x30] sm:$0xff]  ;;  %v40_v11 = vld [vmem:[%s319_s0 + $0x28] sm:$0xff] }
   0x4   :  { %179 = vmatpush.msra.mxu2 %v47_v1  ;;  %180 = vmatpush.msra.mxu3 %v47_v1  ;;  %22 = vst.msk [vmem:[#allocation2 + $0x18] sm:$0xff] %vm18_vm0, %v195_v2  ;;  %v35_v9 = vld [vmem:[%s319_s0] sm:$0xff]  ;;  %v37_v10 = vld [vmem:[%s319_s0 + $0x10] sm:$0xff]  ;;  %v42_v12 = vld [vmem:[%s319_s0 + $0x38] sm:$0xff] }
   0x5   :  { %85 = vmatpush.msra.mxu0 %v47_v1  ;;  %178 = vmatpush.msra.mxu1 %v47_v1  ;;  %23 = vst.msk [vmem:[#allocation2 + $0x20] sm:$0xff] %vm18_vm0, %v195_v2  ;;  %v36_v13 = vld [vmem:[%s319_s0 + $0x8] sm:$0xff]  ;;  %v38_v14 = vld [vmem:[%s319_s0 + $0x18] sm:$0xff]  ;;  %v194_v29 = vld [vmem:[%s318_s2] ss:$0 sm:$0xff] }
   0x6   :  { %182 = vmatpush.msra.mxu2 %v46_v3  ;;  %183 = vmatpush.msra.mxu3 %v46_v3  ;;  %24 = vst.msk [vmem:[#allocation2 + $0x28] sm:$0xff] %vm18_vm0, %v195_v2 }
   0x7   :  { %86 = vmatpush.msra.mxu0 %v46_v3  ;;  %181 = vmatpush.msra.mxu1 %v46_v3  ;;  %25 = vst.msk [vmem:[#allocation2 + $0x30] sm:$0xff] %vm18_vm0, %v195_v2 }
   0x8   :  { %185 = vmatpush.msra.mxu2 %v45_v4  ;;  %186 = vmatpush.msra.mxu3 %v45_v4  ;;  %26 = vst.msk [vmem:[#allocation2 + $0x38] sm:$0xff] %vm18_vm0, %v195_v2  ;;  %v27_v15 = vld [vmem:[#allocation2] sm:$0xff] }
   0x9   :  { %87 = vmatpush.msra.mxu0 %v45_v4  ;;  %184 = vmatpush.msra.mxu1 %v45_v4  ;;  %v28_v27 = vld [vmem:[#allocation2 + $0x8] sm:$0xff] }
   0xa   :  { %188 = vmatpush.msra.mxu2 %v44_v5  ;;  %189 = vmatpush.msra.mxu3 %v44_v5  ;;  %v29_v16 = vld [vmem:[#allocation2 + $0x10] sm:$0xff] }
   0xb   :  { %88 = vmatpush.msra.mxu0 %v44_v5  ;;  %187 = vmatpush.msra.mxu1 %v44_v5  ;;  %v30_v28 = vld [vmem:[#allocation2 + $0x18] sm:$0xff] }
   0xc   :  { %191 = vmatpush.msra.mxu2 %v43_v6  ;;  %192 = vmatpush.msra.mxu3 %v43_v6  ;;  %v31_v21 = vld [vmem:[#allocation2 + $0x20] sm:$0xff] }
   0xd   :  { %171 = vmatmul.msk.f32.vlgmr.msra.gmra.mxu2 %vm49_vm1, %v39_v7  ;;  %173 = vmatmul.msk.f32.vlgmr.msra.gmra.mxu3 %vm49_vm1, %v41_v8  ;;  %v32_v35 = vld [vmem:[#allocation2 + $0x28] sm:$0xff] }
   0xe   :  { %89 = vmatpush.msra.mxu0 %v43_v6  ;;  %190 = vmatpush.msra.mxu1 %v43_v6  ;;  %v33_v22 = vld [vmem:[#allocation2 + $0x30] sm:$0xff] }
   0xf   :  { %167 = vmatmul.msk.f32.vlgmr.msra.gmra.mxu0 %vm49_vm1, %v35_v9  ;;  %169 = vmatmul.msk.f32.vlgmr.msra.gmra.mxu1 %vm49_vm1, %v37_v10  ;;  %v34_v36 = vld [vmem:[#allocation2 + $0x38] sm:$0xff] }
  0x15   :  { %172 = vmatmul.msk.f32.gmra.mxu2 %vm49_vm1, %v40_v11  ;;  %174 = vmatmul.msk.f32.gmra.mxu3 %vm49_vm1, %v42_v12 }
  0x17   :  { %168 = vmatmul.msk.f32.gmra.mxu0 %vm49_vm1, %v36_v13  ;;  %170 = vmatmul.msk.f32.gmra.mxu1 %vm49_vm1, %v38_v14 }
  0x8c   :  { %v91_v17 = vpop.f32.mrf.mxu0  ;;  %v97_v18 = vpop.f32.mrf.mxu1 }
  0x8d   :  { %v115_v19 = vadd.f32 %v91_v17, %v27_v15  ;;  %v117_v20 = vadd.f32 %v97_v18, %v29_v16 }
  0x8f   :  { %124 = vst.msk [vmem:[#allocation2] sm:$0xff] %vm18_vm0, %v115_v19 }
  0x90   :  { %126 = vst.msk [vmem:[#allocation2 + $0x10] sm:$0xff] %vm18_vm0, %v117_v20  ;;  %v103_v23 = vpop.f32.mrf.mxu2  ;;  %v109_v24 = vpop.f32.mrf.mxu3 }
  0x91   :  { %v119_v25 = vadd.f32 %v103_v23, %v31_v21  ;;  %v121_v26 = vadd.f32 %v109_v24, %v33_v22 }
  0x93   :  { %128 = vst.msk [vmem:[#allocation2 + $0x20] sm:$0xff] %vm18_vm0, %v119_v25 }
  0x94   :  { %130 = vst.msk [vmem:[#allocation2 + $0x30] sm:$0xff] %vm18_vm0, %v121_v26  ;;  %v94_v30 = vpop.f32.mrf.mxu0  ;;  %v100_v31 = vpop.f32.mrf.mxu1 }
  0x95   :  { %v116_v32 = vadd.f32 %v94_v30, %v28_v27  ;;  %v118_v33 = vadd.f32 %v100_v31, %v30_v28 }
  0x96   :  { %v135_v34 = vld [vmem:[#allocation2] sm:$0xff] }
  0x97   :  { %v147_v37 = vadd.f32 %v194_v29, %v135_v34  ;;  %v137_v38 = vld [vmem:[#allocation2 + $0x10] sm:$0xff]  ;;  %125 = vst.msk [vmem:[#allocation2 + $0x8] sm:$0xff] %vm18_vm0, %v116_v32 }
  0x98   :  { %v149_v39 = vadd.f32 %v194_v29, %v137_v38  ;;  %127 = vst.msk [vmem:[#allocation2 + $0x18] sm:$0xff] %vm18_vm0, %v118_v33  ;;  %v106_v40 = vpop.f32.mrf.mxu2  ;;  %v112_v41 = vpop.f32.mrf.mxu3 }
  0x99   :  { %155 = vst.msk [vmem:[%s320_s3] sm:$0xff] %vm18_vm0, %v147_v37  ;;  %v120_v42 = vadd.f32 %v106_v40, %v32_v35  ;;  %v122_v43 = vadd.f32 %v112_v41, %v34_v36 }
  0x9a   :  { %157 = vst.msk [vmem:[%s320_s3 + $0x10] sm:$0xff] %vm18_vm0, %v149_v39  ;;  %v139_v44 = vld [vmem:[#allocation2 + $0x20] sm:$0xff] }
  0x9b   :  { %v151_v45 = vadd.f32 %v194_v29, %v139_v44  ;;  %v141_v46 = vld [vmem:[#allocation2 + $0x30] sm:$0xff]  ;;  %129 = vst.msk [vmem:[#allocation2 + $0x28] sm:$0xff] %vm18_vm0, %v120_v42 }
  0x9c   :  { %v153_v47 = vadd.f32 %v194_v29, %v141_v46  ;;  %131 = vst.msk [vmem:[#allocation2 + $0x38] sm:$0xff] %vm18_vm0, %v122_v43 }
  0x9d   :  { %159 = vst.msk [vmem:[%s320_s3 + $0x20] sm:$0xff] %vm18_vm0, %v151_v45 }
  0x9e   :  { %161 = vst.msk [vmem:[%s320_s3 + $0x30] sm:$0xff] %vm18_vm0, %v153_v47  ;;  %v136_v48 = vld [vmem:[#allocation2 + $0x8] sm:$0xff] }
  0x9f   :  { %v148_v49 = vadd.f32 %v194_v29, %v136_v48  ;;  %v138_v50 = vld [vmem:[#allocation2 + $0x18] sm:$0xff] }
  0xa0   :  { %v150_v51 = vadd.f32 %v194_v29, %v138_v50 }
  0xa1   :  { %156 = vst.msk [vmem:[%s320_s3 + $0x8] sm:$0xff] %vm18_vm0, %v148_v49 }
  0xa2   :  { %158 = vst.msk [vmem:[%s320_s3 + $0x18] sm:$0xff] %vm18_vm0, %v150_v51  ;;  %v140_v52 = vld [vmem:[#allocation2 + $0x28] sm:$0xff] }
  0xa3   :  { %v152_v53 = vadd.f32 %v194_v29, %v140_v52  ;;  %v142_v54 = vld [vmem:[#allocation2 + $0x38] sm:$0xff] }
  0xa4   :  { %v154_v55 = vadd.f32 %v194_v29, %v142_v54 }
  0xa5   :  { %160 = vst.msk [vmem:[%s320_s3 + $0x28] sm:$0xff] %vm18_vm0, %v152_v53 }
  0xa6   :  { %162 = vst.msk [vmem:[%s320_s3 + $0x38] sm:$0xff] %vm18_vm0, %v154_v55 }

// kernel: decoder_forward.5
= control target key start
LH: loop header
LB: loop body
LE: loop exit
PB: predicated region body
PF: predicated region fallthrough
CT: control target
= control target key end

     0   :  { %vm18_vm0 = vcmask 261120   ;;  %v109_v2 = vmov 0.0   ;;  %vm21_vm1 = vcmask 257024   ;;  %s175_s1 = inlined_call_operand.vmem [shape: f32[32,32], index: 1, kind: input, shape index: {}]   ;;  %s176_s0 = inlined_call_operand.vmem [shape: f32[20,32], index: 0, kind: input, shape index: {}]   ;;  %s177_s2 = inlined_call_operand.vmem [shape: f32[1,32], index: 2, kind: input, shape index: {}]   ;;  %s178_s3 = inlined_call_operand.vmem [shape: f32[20,32], index: 3, kind: output, shape index: {}]  }
   0x1   :  { %v32_v0 = vld [vmem:[%s175_s1 + $0x18] sm:$0xff]  ;;  %v31_v1 = vld [vmem:[%s175_s1 + $0x10] sm:$0xff]  ;;  %19 = vst.msk [vmem:[#allocation2] sm:$0xff] %vm18_vm0, %v109_v2  ;;  %v30_v3 = vld [vmem:[%s175_s1 + $0x8] sm:$0xff] }
   0x2   :  { %100 = vmatpush.msra.mxu2 %v32_v0  ;;  %55 = vmatpush.msra.mxu0 %v32_v0  ;;  %20 = vst.msk [vmem:[#allocation2 + $0x8] sm:$0xff] %vm18_vm0, %v109_v2  ;;  %v29_v4 = vld [vmem:[%s175_s1] sm:$0xff]  ;;  %v28_v5 = vld [vmem:[%s176_s0 + $0x10] sm:$0xf]  ;;  %v27_v7 = vld [vmem:[%s176_s0 + $0x8] sm:$0xff] }
   0x3   :  { %99 = vmatpush.msra.mxu1 %v32_v0  ;;  %v26_v6 = vld [vmem:[%s176_s0] sm:$0xff]  ;;  %22 = vst.msk [vmem:[#allocation2 + $0x10] sm:$0xf] %vm21_vm1, %v109_v2 }
   0x4   :  { %102 = vmatpush.msra.mxu2 %v31_v1  ;;  %56 = vmatpush.msra.mxu0 %v31_v1  ;;  %v108_v17 = vld [vmem:[%s177_s2] ss:$0 sm:$0xff] }
   0x5   :  { %101 = vmatpush.msra.mxu1 %v31_v1 }
   0x6   :  { %104 = vmatpush.msra.mxu2 %v30_v3  ;;  %57 = vmatpush.msra.mxu0 %v30_v3 }
   0x7   :  { %103 = vmatpush.msra.mxu1 %v30_v3 }
   0x8   :  { %106 = vmatpush.msra.mxu2 %v29_v4  ;;  %58 = vmatpush.msra.mxu0 %v29_v4  ;;  %v23_v8 = vld [vmem:[#allocation2] sm:$0xff] }
   0x9   :  { %98 = vmatmul.msk.f32.vlgmr.msra.gmra.mxu2 %vm18_vm0, %v28_v5  ;;  %105 = vmatpush.msra.mxu1 %v29_v4  ;;  %v24_v9 = vld [vmem:[#allocation2 + $0x8] sm:$0xff] }
   0xa   :  { %96 = vmatmul.msk.f32.vlgmr.msra.gmra.mxu0 %vm18_vm0, %v26_v6  ;;  %97 = vmatmul.msk.f32.vlgmr.msra.gmra.mxu1 %vm18_vm0, %v27_v7  ;;  %v25_v14 = vld [vmem:[#allocation2 + $0x10] sm:$0xf] }
  0x87   :  { %v60_v10 = vpop.f32.mrf.mxu0  ;;  %v63_v11 = vpop.f32.mrf.mxu1 }
  0x88   :  { %v69_v12 = vadd.f32 %v60_v10, %v23_v8  ;;  %v70_v13 = vadd.f32 %v63_v11, %v24_v9 }
  0x8a   :  { %72 = vst.msk [vmem:[#allocation2] sm:$0xff] %vm18_vm0, %v69_v12 }
  0x8b   :  { %73 = vst.msk [vmem:[#allocation2 + $0x8] sm:$0xff] %vm18_vm0, %v70_v13 }
  0x8c   :  { %v66_v15 = vpop.f32.mrf.mxu2 }
  0x8d   :  { %v71_v16 = vadd.f32 %v66_v15, %v25_v14 }
  0x8f   :  { %75 = vst.msk [vmem:[#allocation2 + $0x10] sm:$0xf] %vm21_vm1, %v71_v16 }
  0x91   :  { %v79_v18 = vld [vmem:[#allocation2] sm:$0xff] }
  0x92   :  { %v80_v19 = vld [vmem:[#allocation2 + $0x8] sm:$0xff]  ;;  %v86_v20 = vadd.f32 %v108_v17, %v79_v18 }
  0x93   :  { %v87_v21 = vadd.f32 %v108_v17, %v80_v19 }
  0x94   :  { %89 = vst.msk [vmem:[%s178_s3] sm:$0xff] %vm18_vm0, %v86_v20 }
  0x95   :  { %90 = vst.msk [vmem:[%s178_s3 + $0x8] sm:$0xff] %vm18_vm0, %v87_v21 }
  0x96   :  { %v81_v22 = vld [vmem:[#allocation2 + $0x10] sm:$0xf] }
  0x97   :  { %v88_v23 = vadd.f32 %v108_v17, %v81_v22 }
  0x99   :  { %91 = vst.msk [vmem:[%s178_s3 + $0x10] sm:$0xf] %vm21_vm1, %v88_v23 }

// kernel: decoder_forward.9
= control target key start
LH: loop header
LB: loop body
LE: loop exit
PB: predicated region body
PF: predicated region fallthrough
CT: control target
= control target key end

     0   :  { %10 = vsyncpa [#allocation3], 0  ;;  %s729_s0 = inlined_call_operand.vmem [shape: f32[4,17,32], index: 0, kind: input, shape index: {}]   ;;  %s730_s1 = inlined_call_operand.vmem [shape: f32[1,32], index: 1, kind: input, shape index: {}]   ;;  %s731_s2 = inlined_call_operand.vmem [shape: f32[1,32], index: 2, kind: input, shape index: {}]   ;;  %s732_s3 = inlined_call_operand.vmem [shape: f32[32,48], index: 3, kind: input, shape index: {}]   ;;  %s733_s4 = inlined_call_operand.vmem [shape: f32[1,48], index: 4, kind: input, shape index: {}]   ;;  %s734_s5 = inlined_call_operand.hbm [shape: f32[4,16,48], index: 5, kind: output, shape index: {}]  }
   0x1   :  { %12 = vsyncpa [#allocation3 + $0x1], 0  ;;  %s610_s18 = smov 0   ;;  %s612_s19 = smov 0  }
   0x2   :  { %s614_s20 = smov 0   ;;  %s616_s21 = smov 0  }
   0x3 LB: > { %s631_s22 = sadd.s32 4294967295, %s575_s21   ;;  %s441_s23 = sadd.s32 4294967294, %s575_s21   ;;  %s575_s21 = sphi %s616_s21, %s740_s21   ;;  %s571_s20 = sphi %s614_s20, %s739_s20   ;;  %s567_s19 = sphi %s612_s19, %s738_s19   ;;  %s563_s18 = sphi %s610_s18, %s737_s18  }
   0x4   : > { %s635_s24 = sadd.s32 1, %s575_s21   ;;  %s135_s25 = sadd.s32 1, %s571_s20 }
   0x5   : > { %s132_s26 = ssub.s32 %s575_s21, %s635_s24  ;;  %p145_p0 = scmp.ne.s32.totalorder %s571_s20, %s567_s19 }
   0x6   : > { %p133_p1 = scmp.eq.s32.totalorder %s132_s26, 0  ;;  %p146_p2 = scmp.eq.s32.totalorder %s631_s22, 3 }
   0x7   : > { %p151_p3 = scmp.ne.s32.totalorder %s567_s19, %s563_s18  ;;  %p152_p4 = scmp.eq.s32.totalorder %s441_s23, 3 }
   0x8   : > { %s646_s27 = scalar_select %p133_p1, %s571_s20, %s135_s25  }
   0x9   : > { %p648_p5 = por %p146_p2, %p145_p0  ;;  %p652_p6 = por %p152_p4, %p151_p3 }
   0xa   : > { %p444_p7 = scmp.ge.s32.totalorder %s575_s21, 1  ;;  %p190_p8 = scmp.lt.s32.totalorder %s575_s21, 5 }
   0xc   : > { %p191_p9 = pnand %p444_p7, %p190_p8 }
   0xd   : > { %p218_p10 = scmp.lt.s32.totalorder (!%p191_p9), %s631_s22, 3  ;;  %s454_s10 = sshll.u32 (!%p191_p9), %s631_s22, 4 }
   0xe   : > { %194 = sbr.rel (%p191_p9) target bundleno = 444 (0x1bc), region = 40  ;;  %s375_s13 = scalar_lea.hbm (!%p191_p9), %s734_s5, %s454_s10 }
   0xf   : > { %s378_s16 = sshll.u32 (!%p191_p9), %s375_s13, 4  ;;  %s379_s16 = int_to_ptr.hbm [resolvable:$true] %s378_s16 }
  0x10   : > { %s527_s23 = sshra.s32 (!%p191_p9), %s379_s16, 4  ;;  %s528_s23 = int_to_ptr.hbm [resolvable:$true] %s527_s23 }
  0x11   : > { %p534_p0 = scmp.lt.s32.totalorder (!%p191_p9), %s528_s23, %s734_s5 }
  0x13   : > { %s219_s30 = scalar_select %p218_p10, %s631_s22, 3  ;;  %vm226_vm0 = vcmask 261121   ;;  %vm234_vm1 = vcmask 253952   ;;  %vm230_vm2 = vcmask 261120   ;;  %v577_v6 = vmov 32.0   ;;  %v319_v29 = vld [vmem:[%s732_s3 + $0x18] sm:$0xff] }
  0x14   : > { %505 = vrcp.f32 %v577_v6  ;;  %349 = vmatpush.msra.mxu0 %v319_v29  ;;  %455 = vmatpush.msra.mxu1 %v319_v29  ;;  %v318_v31 = vld [vmem:[%s732_s3 + $0x10] sm:$0xff]  ;;  %v317_v33 = vld [vmem:[%s732_s3 + $0x8] sm:$0xff]  ;;  %v316_v34 = vld [vmem:[%s732_s3] sm:$0xff]  ;;  %vm327_vm12 = vcmask 1046528   ;;  %vm360_vm14 = vcmask 392192   ;;  %s529_s22 = scalar_lea.hbm %s528_s23, 16 }
  0x15   : > { %s459_s6 = smul.u32 24, %s219_s30  ;;  %v502_v53 = vld [vmem:[%s730_s1] ss:$0 sm:$0xff]  ;;  %p530_p11 = scmp.ne.s32.totalorder %s528_s23, %s529_s22 }
  0x16   : > { %350 = vmatpush.msra.mxu0 %v318_v31  ;;  %456 = vmatpush.msra.mxu1 %v318_v31  ;;  %v503_v59 = vld [vmem:[%s731_s2] ss:$0 sm:$0xff]  ;;  %s533_s30 = scalar_lea.hbm %s734_s5, 64 }
  0x17   : > { %s222_s9 = scalar_lea.vmem %s729_s0, %s459_s6  ;;  %s215_s6 = sand.u32 1, %s567_s19  }
  0x18   : > { %v223_v0 = vld [vmem:[%s222_s9] sm:$0xff]  ;;  %v225_v1 = vld [vmem:[%s222_s9 + $0x10] sm:$0x1]  ;;  %v224_v4 = vld [vmem:[%s222_s9 + $0x8] sm:$0xff]  ;;  %351 = vmatpush.msra.mxu0 %v317_v33  ;;  %457 = vmatpush.msra.mxu1 %v317_v33  ;;  %s445_s7 = sshll.u32 %s215_s6, 4  ;;  %s364_s17 = scalar_lea.sflag [#allocation3], %s215_s6 }
  0x19   : > { %v227_v2 = vsel %vm226_vm0, %v223_v0, 0.0  ;;  %v235_v3 = vsel %vm234_vm1, %v225_v1, 0.0  ;;  %v231_v5 = vsel %vm230_vm2, %v224_v4, 0.0  ;;  %s217_s14 = scalar_lea.vmem [#allocation2], %s445_s7  ;;  %p531_p12 = pnand %p530_p11, %p648_p5 }
  0x1a   : > { %228 = vadd.xlane.f32.xlu0 %v227_v2  ;;  %236 = vadd.xlane.f32.xlu1 %v235_v3  ;;  %v506_v7 = vpop.eup %505  ;;  %s376_s15 = sshll.u32 %s217_s14, 4  ;;  %p535_p1 = scmp.lt.s32.totalorder %s533_s30, %s529_s22  ;;  %s377_s15 = int_to_ptr.vmem [resolvable:$true] %s376_s15 }
  0x1b   : > { %v239_v8 = vmul.f32 32.0, %v506_v7  ;;  %vm243_vm3 = vweird.f32 %v506_v7  ;;  %352 = vmatpush.msra.mxu0 %v316_v34  ;;  %458 = vmatpush.msra.mxu1 %v316_v34  ;;  %p532_p13 = pneg %p531_p12 }
  0x1c   : > { %p536_p2 = por %p535_p1, %p534_p0 }
  0x1d   : > { %v240_v9 = vsub.f32 1.0, %v239_v8 }
  0x1e   : > { %p537_p3 = pnand %p536_p2, %p532_p13 }
  0x1f   : > { %v241_v10 = vmul.f32 %v506_v7, %v240_v9 }
  0x21   : > { %v242_v11 = vadd.f32 %v506_v7, %v241_v10 }
  0x22   : > { %232 = vadd.xlane.f32.xlu0 %v231_v5 }
  0x23   : > { %v244_v12 = vsel %vm243_vm3, %v506_v7, %v242_v11 }
  0x8d   : > { %v229_v13 = vpop.xlane.xlu0 %228  ;;  %v237_v17 = vpop.xlane.xlu1 %236 }
  0x8e   : > { %v245_v14 = vmul.f32 %v244_v12, %v229_v13  ;;  %v247_v21 = vmul.f32 %v244_v12, %v237_v17 }
  0x90   : > { %v248_v15 = vsub.f32 %v223_v0, %v245_v14  ;;  %v667_v23 = vsub.f32 %v225_v1, %v247_v21  ;;  %v504_v14 = vld [vmem:[%s733_s4] ss:$0 sm:$0xff] }
  0x92   : > { %v251_v16 = vmul.f32 %v248_v15, %v248_v15  ;;  %v253_v26 = vmul.f32 %v667_v23, %v667_v23 }
  0x94   : > { %v254_v18 = vsel %vm226_vm0, %v251_v16, 0.0  ;;  %v260_v27 = vsel %vm234_vm1, %v253_v26, 0.0 }
  0x95   : > { %255 = vadd.xlane.f32.xlu1 %v254_v18  ;;  %v233_v19 = vpop.xlane.xlu0 %232 }
  0x96   : > { %v246_v20 = vmul.f32 %v244_v12, %v233_v19 }
  0x98   : > { %v249_v22 = vsub.f32 %v224_v4, %v246_v20 }
  0x9a   : > { %v252_v24 = vmul.f32 %v249_v22, %v249_v22 }
  0x9c   : > { %v257_v25 = vsel %vm230_vm2, %v252_v24, 0.0 }
  0x9d   : > { %258 = vadd.xlane.f32.xlu2 %v257_v25 }
  0xa5   : > { %261 = vadd.xlane.f32.xlu2 %v260_v27 }
 0x108   : > { %v256_v28 = vpop.xlane.xlu1 %255 }
 0x109   : > { %v263_v30 = vmul.f32 %v256_v28, %v244_v12 }
 0x10b   : > { %v266_v32 = vadd.f32 1e-12, %v263_v30 }
 0x10d   : > { %507 = vrsqrt.f32 %v266_v32  ;;  %vm275_vm5 = vweird.f32 %v266_v32 }
 0x110   : > { %v259_v35 = vpop.xlane.xlu2 %258 }
 0x111   : > { %v264_v36 = vmul.f32 %v259_v35, %v244_v12 }
 0x113   : > { %v508_v37 = vpop.eup %507  ;;  %v267_v38 = vadd.f32 1e-12, %v264_v36 }
 0x114   : > { %v270_v39 = vmul.f32 %v508_v37, %v266_v32  ;;  %vm276_vm4 = vweird.f32 %v508_v37 }
 0x115   : > { %509 = vrsqrt.f32 %v267_v38  ;;  %vm277_vm6 = vmor %vm275_vm5, %vm276_vm4  ;;  %vm285_vm8 = vweird.f32 %v267_v38 }
 0x116   : > { %v271_v40 = vmul.f32 %v508_v37, %v270_v39 }
 0x118   : > { %v272_v41 = vmul.f32 0.5, %v271_v40  ;;  %v262_v42 = vpop.xlane.xlu2 %261 }
 0x119   : > { %v265_v43 = vmul.f32 %v262_v42, %v244_v12 }
 0x11a   : > { %v273_v44 = vsub.f32 1.5, %v272_v41 }
 0x11b   : > { %v510_v45 = vpop.eup %509  ;;  %v268_v46 = vadd.f32 1e-12, %v265_v43 }
 0x11c   : > { %v274_v47 = vmul.f32 %v508_v37, %v273_v44  ;;  %v280_v48 = vmul.f32 %v510_v45, %v267_v38  ;;  %vm286_vm7 = vweird.f32 %v510_v45 }
 0x11d   : > { %511 = vrsqrt.f32 %v268_v46  ;;  %vm287_vm9 = vmor %vm285_vm8, %vm286_vm7  ;;  %vm295_vm11 = vweird.f32 %v268_v46 }
 0x11e   : > { %v278_v49 = vsel %vm277_vm6, %v508_v37, %v274_v47  ;;  %v281_v50 = vmul.f32 %v510_v45, %v280_v48 }
 0x11f   : > { %v299_v52 = vmul.f32 %v278_v49, %v248_v15 }
 0x120   : > { %v282_v51 = vmul.f32 0.5, %v281_v50 }
 0x121   : > { %v306_v58 = vmul.f32 %v502_v53, %v299_v52 }
 0x122   : > { %v283_v54 = vsub.f32 1.5, %v282_v51 }
 0x123   : > { %v512_v55 = vpop.eup %511  ;;  %v313_v1 = vadd.f32 %v503_v59, %v306_v58 }
 0x124   : > { %v284_v56 = vmul.f32 %v510_v45, %v283_v54  ;;  %v290_v57 = vmul.f32 %v512_v55, %v268_v46  ;;  %vm296_vm10 = vweird.f32 %v512_v55 }
 0x125   : > { %vm297_vm13 = vmor %vm295_vm11, %vm296_vm10  ;;  %v328_v5 = vrot.slane %v313_v1, 1 }
 0x126   : > { %v288_v60 = vsel %vm287_vm9, %v510_v45, %v284_v56  ;;  %v291_v61 = vmul.f32 %v512_v55, %v290_v57 }
 0x127   : > { %v300_v62 = vmul.f32 %v288_v60, %v249_v22 }
 0x128   : > { %v292_v63 = vmul.f32 0.5, %v291_v61 }
 0x129   : > { %v307_v0 = vmul.f32 %v502_v53, %v300_v62 }
 0x12a   : > { %v293_v2 = vsub.f32 1.5, %v292_v63 }
 0x12b   : > { %v314_v3 = vadd.f32 %v503_v59, %v307_v0 }
 0x12c   : > { %v294_v4 = vmul.f32 %v512_v55, %v293_v2 }
 0x12d   : > { %v329_v6 = vrot.slane %v314_v3, 1 }
 0x12e   : > { %v298_v7 = vsel %vm297_vm13, %v512_v55, %v294_v4 }
 0x12f   : > { %v301_v8 = vmul.f32 %v298_v7, %v667_v23  ;;  %v330_v9 = vsel %vm327_vm12, %v328_v5, %v329_v6 }
 0x130   : > { %447 = vmatmul.msk.f32.vlgmr.msra.gmra.mxu0 %vm230_vm2, %v330_v9 }
 0x131   : > { %v308_v10 = vmul.f32 %v502_v53, %v301_v8 }
 0x133   : > { %v315_v11 = vadd.f32 %v503_v59, %v308_v10 }
 0x135   : > { %v331_v12 = vrot.slane %v315_v11, 1 }
 0x137   : > { %v332_v13 = vsel %vm327_vm12, %v329_v6, %v331_v12 }
 0x138   : > { %448 = vmatmul.msk.f32.vlgmr.msra.gmra.mxu1 %vm230_vm2, %v332_v13 }
 0x1ad   : > { %v354_v15 = vpop.f32.mrf.mxu0 }
 0x1ae   : > { %v355_v16 = vadd.f32 %v504_v14, %v354_v15 }
 0x1b0   : > { %361 = vst.msk [vmem:[%s217_s14] sm:$0xff] %vm360_vm14, %v355_v16 }
 0x1b5   : > { %v357_v17 = vpop.f32.mrf.mxu1 }
 0x1b6   : > { %v358_v18 = vadd.f32 %v504_v14, %v357_v17 }
 0x1b8   : > { %362 = vst.msk [vmem:[%s217_s14 + $0x8] sm:$0xff] %vm360_vm14, %v358_v18 }
 0x1b9   : > { %540 = shalt.err (!%p537_p3)
}
 0x1ba   : > { %s578_s6 = smov 128   ;;  %s579_s9 = smov 8  }
 0x1bb   : > { %460 = dma.vmem_to_hbm [thread:$0]  (%p648_p5), %s377_s15, 256, %s379_s16, %s364_s17, %s578_s6, %s578_s6, %s579_s9  }
 0x1bc PF: > { %p466_p4 = scmp.ge.s32.totalorder %s575_s21, 2  ;;  %s393_s10 = sand.u32 1, %s563_s18  }
 0x1bd   : > { %s394_s11 = scalar_lea.sflag [#allocation3], %s393_s10 }
 0x1be   : > { %p463_p7 = pnand %p466_p4, %p652_p6 }
 0x1c0   : > { %p464_p8 = pneg %p463_p7 }
 0x1c2   : > { %558 = dma.done.wait (%p464_p8), %s394_s11, 256  }
 0x1c3   : > { %560 = vsyncadd (%p464_p8), %s394_s11, 4294967040  ;;  %p15_p9 = scmp.ge.s32.totalorder %s635_s24, 6   ;;  %s737_s18 = smov %s567_s19 }
 0x1c4   : > { %s738_s19 = smov %s571_s20  ;;  %s739_s20 = smov %s646_s27 }
 0x1c5   : > { %s740_s21 = smov %s635_s24  ;;  %17 = sbr.rel (!%p15_p9) target bundleno = 3 (0x3), region = 75 }
 0x1ca   :  { %400 = vsyncpa [#allocation3], 1 }
 0x1cb   :  { %402 = vsyncpa [#allocation3 + $0x1], 1 }

// kernel: decoder_forward.7
= control target key start
LH: loop header
LB: loop body
LE: loop exit
PB: predicated region body
PF: predicated region fallthrough
CT: control target
= control target key end

     0   :  { %s2057_s29 = smov 0   ;;  %s2472_s0 = inlined_call_operand.vmem [shape: f32[4,1,32], index: 0, kind: input, shape index: {}]   ;;  %s2473_s1 = inlined_call_operand.vmem [shape: f32[4,17,32], index: 1, kind: input, shape index: {}]   ;;  %s2474_s2 = inlined_call_operand.vmem [shape: f32[1,32], index: 2, kind: input, shape index: {}]   ;;  %s2475_s3 = inlined_call_operand.vmem [shape: f32[1,32], index: 3, kind: input, shape index: {}]   ;;  %s2476_s4 = inlined_call_operand.vmem [shape: f32[32,96], index: 4, kind: input, shape index: {}]   ;;  %s2477_s5 = inlined_call_operand.vmem [shape: f32[1,96], index: 5, kind: input, shape index: {}]   ;;  %s2478_s6 = inlined_call_operand.vmem [shape: f32[32,32], index: 6, kind: input, shape index: {}]   ;;  %s2479_s7 = inlined_call_operand.vmem [shape: f32[1,32], index: 7, kind: input, shape index: {}]   ;;  %s2480_s8 = inlined_call_operand.vmem [shape: f32[1,32], index: 8, kind: input, shape index: {}]   ;;  %s2481_s9 = inlined_call_operand.vmem [shape: f32[1,32], index: 9, kind: input, shape index: {}]   ;;  %s2482_s10 = inlined_call_operand.vmem [shape: f32[32,64], index: 10, kind: input, shape index: {}]   ;;  %s2483_s11 = inlined_call_operand.vmem [shape: f32[1,64], index: 11, kind: input, shape index: {}]   ;;  %s2484_s12 = inlined_call_operand.vmem [shape: f32[64,32], index: 12, kind: input, shape index: {}]   ;;  %s2485_s13 = inlined_call_operand.vmem [shape: f32[1,32], index: 13, kind: input, shape index: {}]   ;;  %s2486_s14 = inlined_call_operand.vmem [shape: f32[4,17,32], index: 14, kind: output, shape index: {}]  }
   0x1 LB: > { %s1772_s30 = sadd.s32 4294967295, %s1965_s29   ;;  %p1776_p0 = scmp.ge.s32.totalorder %s1965_s29, 1  ;;  %s1965_s29 = sphi %s2057_s29, %s24_s29  }
   0x2   : > { %p420_p1 = scmp.lt.s32.totalorder %s1965_s29, 5 }
   0x4   : > { %p421_p2 = pnand %p1776_p0, %p420_p1 }
   0x5   : > { %p469_p3 = scmp.lt.s32.totalorder (!%p421_p2), %s1772_s30, 3  ;;  %s1968_s24 = smov (!%p421_p2), 96  }
   0x6   : > { %424 = sbr.rel (%p421_p2) target bundleno = 1892 (0x764), region = 76  ;;  %s1969_s25 = smov (!%p421_p2), 88  }
   0x7   : > { %s1970_s26 = smov (!%p421_p2), 120   ;;  %s1971_s27 = smov (!%p421_p2), 72  }
   0x8   : > { %s1972_s28 = smov (!%p421_p2), 104   ;;  %s1973_s15 = smov (!%p421_p2), 80  }
   0x9   : > { %s1974_s16 = smov (!%p421_p2), 112   ;;  %s1976_s19 = smov (!%p421_p2), 40  }
   0xa   : > { %s1977_s20 = smov (!%p421_p2), 48   ;;  %s1978_s22 = smov (!%p421_p2), 56  }
   0xb   : > { %v486_v0 = vlaneseq  ;;  %s2490_s30 = smov (!%p469_p3, %s1772_s30), 3  ;;  %vm508_vm1 = vcmask 253952   ;;  %vm501_vm2 = vcmask 261120   ;;  %v1967_v10 = vmov 32.0   ;;  %v591_v32 = vld [vmem:[%s2476_s4 + $0x18] sm:$0xff]  ;;  %v590_v33 = vld [vmem:[%s2476_s4 + $0x10] sm:$0xff] }
   0xc   : > { %s471_s17 = scalar_lea.vmem %s2472_s0, %s2490_s30  ;;  %s1836_s18 = smul.u32 24, %s2490_s30  ;;  %1889 = vrcp.f32 %v1967_v10  ;;  %617 = vmatpush.msra.mxu0 %v591_v32  ;;  %v589_v34 = vld [vmem:[%s2476_s4 + $0x8] sm:$0xff]  ;;  %v588_v35 = vld [vmem:[%s2476_s4] sm:$0xff]  ;;  %vm643_vm13 = vcmask 64512   ;;  %vm731_vm14 = vcmask 1040384   ;;  %vm685_vm15 = vcmask 138240  }
   0xd   : > { %v487_v1 = vshrl.u32 %v486_v0, 7  ;;  %v1880_v2 = vld [vmem:[%s471_s17] ss:$0 sm:$0xff]  ;;  %s1975_s17 = smov 64   ;;  %s1979_s23 = smov 8  }
   0xe   : > { %s2077_s21 = scalar_lea.vmem %s2473_s1, %s1836_s18  ;;  %618 = vmatpush.msra.mxu0 %v590_v33  ;;  %v1881_v53 = vld [vmem:[%s2474_s2] ss:$0 sm:$0xff] }
   0xf   : > { %vm490_vm0 = vcmp.eq.s32.totalorder %v487_v1, 0  ;;  %v482_v3 = vld [vmem:[%s2077_s21] sm:$0xff]  ;;  %v484_v4 = vld [vmem:[%s2077_s21 + $0x10] sm:$0x1]  ;;  %v483_v8 = vld [vmem:[%s2077_s21 + $0x8] sm:$0xff] }
  0x10   : > { %v2081_v5 = vsel %vm490_vm0, %v1880_v2, %v482_v3  ;;  %v509_v6 = vsel %vm508_vm1, %v484_v4, 0.0  ;;  %v505_v9 = vsel %vm501_vm2, %v483_v8, 0.0  ;;  %619 = vmatpush.msra.mxu0 %v589_v34  ;;  %v1882_v57 = vld [vmem:[%s2475_s3] ss:$0 sm:$0xff]  ;;  %vm692_vm0 = vcmask 131072  }
  0x11   : > { %v502_v7 = vsel %vm501_vm2, %v2081_v5, 0.0  ;;  %510 = vadd.xlane.f32.xlu1 %v509_v6 }
  0x12   : > { %503 = vadd.xlane.f32.xlu0 %v502_v7  ;;  %v1890_v11 = vpop.eup %1889  ;;  %620 = vmatpush.msra.mxu0 %v588_v35 }
  0x13   : > { %v513_v12 = vmul.f32 32.0, %v1890_v11  ;;  %vm517_vm3 = vweird.f32 %v1890_v11 }
  0x15   : > { %v514_v13 = vsub.f32 1.0, %v513_v12 }
  0x17   : > { %v515_v14 = vmul.f32 %v1890_v11, %v514_v13 }
  0x19   : > { %v516_v15 = vadd.f32 %v1890_v11, %v515_v14  ;;  %v1883_v14 = vld [vmem:[%s2477_s5] ss:$0 sm:$0xff] }
  0x1a   : > { %506 = vadd.xlane.f32.xlu0 %v505_v9 }
  0x1b   : > { %v2088_v16 = vsel %vm517_vm3, %v1890_v11, %v516_v15 }
  0x84   : > { %v511_v21 = vpop.xlane.xlu1 %510 }
  0x85   : > { %v504_v17 = vpop.xlane.xlu0 %503  ;;  %v521_v25 = vmul.f32 %v2088_v16, %v511_v21 }
  0x86   : > { %v519_v18 = vmul.f32 %v2088_v16, %v504_v17 }
  0x87   : > { %v2095_v27 = vsub.f32 %v484_v4, %v521_v25 }
  0x88   : > { %v522_v19 = vsub.f32 %v2081_v5, %v519_v18 }
  0x89   : > { %v527_v30 = vmul.f32 %v2095_v27, %v2095_v27 }
  0x8a   : > { %v525_v20 = vmul.f32 %v522_v19, %v522_v19 }
  0x8b   : > { %v534_v31 = vsel %vm508_vm1, %v527_v30, 0.0 }
  0x8c   : > { %v528_v22 = vsel %vm501_vm2, %v525_v20, 0.0 }
  0x8d   : > { %529 = vadd.xlane.f32.xlu1 %v528_v22  ;;  %v507_v23 = vpop.xlane.xlu0 %506 }
  0x8e   : > { %v520_v24 = vmul.f32 %v2088_v16, %v507_v23 }
  0x90   : > { %v523_v26 = vsub.f32 %v483_v8, %v520_v24 }
  0x92   : > { %v526_v28 = vmul.f32 %v523_v26, %v523_v26 }
  0x94   : > { %v531_v29 = vsel %vm501_vm2, %v526_v28, 0.0 }
  0x95   : > { %532 = vadd.xlane.f32.xlu2 %v531_v29 }
  0x9d   : > { %535 = vadd.xlane.f32.xlu2 %v534_v31 }
 0x100   : > { %v530_v36 = vpop.xlane.xlu1 %529 }
 0x101   : > { %v537_v37 = vmul.f32 %v530_v36, %v2088_v16 }
 0x103   : > { %v540_v38 = vadd.f32 1e-12, %v537_v37 }
 0x105   : > { %1891 = vrsqrt.f32 %v540_v38  ;;  %vm549_vm5 = vweird.f32 %v540_v38 }
 0x108   : > { %v533_v39 = vpop.xlane.xlu2 %532 }
 0x109   : > { %v538_v40 = vmul.f32 %v533_v39, %v2088_v16 }
 0x10b   : > { %v1892_v41 = vpop.eup %1891  ;;  %v541_v42 = vadd.f32 1e-12, %v538_v40 }
 0x10c   : > { %v544_v43 = vmul.f32 %v1892_v41, %v540_v38  ;;  %vm550_vm4 = vweird.f32 %v1892_v41 }
 0x10d   : > { %1893 = vrsqrt.f32 %v541_v42  ;;  %vm551_vm6 = vmor %vm549_vm5, %vm550_vm4  ;;  %vm559_vm8 = vweird.f32 %v541_v42 }
 0x10e   : > { %v545_v44 = vmul.f32 %v1892_v41, %v544_v43 }
 0x110   : > { %v546_v45 = vmul.f32 0.5, %v545_v44  ;;  %v536_v46 = vpop.xlane.xlu2 %535 }
 0x111   : > { %v539_v47 = vmul.f32 %v536_v46, %v2088_v16 }
 0x112   : > { %v547_v48 = vsub.f32 1.5, %v546_v45 }
 0x113   : > { %v1894_v49 = vpop.eup %1893  ;;  %v542_v50 = vadd.f32 1e-12, %v539_v47 }
 0x114   : > { %v548_v51 = vmul.f32 %v1892_v41, %v547_v48  ;;  %v554_v52 = vmul.f32 %v1894_v49, %v541_v42  ;;  %vm560_vm7 = vweird.f32 %v1894_v49 }
 0x115   : > { %1895 = vrsqrt.f32 %v542_v50  ;;  %vm561_vm9 = vmor %vm559_vm8, %vm560_vm7  ;;  %vm569_vm11 = vweird.f32 %v542_v50 }
 0x116   : > { %v552_v54 = vsel %vm551_vm6, %v1892_v41, %v548_v51  ;;  %v555_v55 = vmul.f32 %v1894_v49, %v554_v52 }
 0x117   : > { %v573_v56 = vmul.f32 %v552_v54, %v522_v19 }
 0x118   : > { %v556_v58 = vmul.f32 0.5, %v555_v55 }
 0x119   : > { %v579_v59 = vmul.f32 %v1881_v53, %v573_v56 }
 0x11a   : > { %v557_v60 = vsub.f32 1.5, %v556_v58 }
 0x11b   : > { %v1896_v61 = vpop.eup %1895  ;;  %v585_v62 = vadd.f32 %v1882_v57, %v579_v59 }
 0x11c   : > { %v558_v63 = vmul.f32 %v1894_v49, %v557_v60  ;;  %v564_v0 = vmul.f32 %v1896_v61, %v542_v50  ;;  %vm570_vm10 = vweird.f32 %v1896_v61 }
 0x11d   : > { %1779 = vmatmul.msk.f32.vlgmr.msra.gmra.mxu0 %vm501_vm2, %v585_v62  ;;  %vm571_vm12 = vmor %vm569_vm11, %vm570_vm10 }
 0x11e   : > { %v562_v1 = vsel %vm561_vm9, %v1894_v49, %v558_v63  ;;  %v565_v2 = vmul.f32 %v1896_v61, %v564_v0 }
 0x11f   : > { %v574_v3 = vmul.f32 %v562_v1, %v523_v26 }
 0x120   : > { %v566_v4 = vmul.f32 0.5, %v565_v2 }
 0x121   : > { %v580_v6 = vmul.f32 %v1881_v53, %v574_v3 }
 0x122   : > { %v567_v7 = vsub.f32 1.5, %v566_v4 }
 0x123   : > { %v586_v8 = vadd.f32 %v1882_v57, %v580_v6 }
 0x124   : > { %v568_v9 = vmul.f32 %v1896_v61, %v567_v7 }
 0x125   : > { %1780 = vmatmul.msk.f32.gmra.mxu0 %vm501_vm2, %v586_v8 }
 0x126   : > { %v572_v10 = vsel %vm571_vm12, %v1896_v61, %v568_v9 }
 0x127   : > { %v575_v11 = vmul.f32 %v572_v10, %v2095_v27 }
 0x129   : > { %v581_v12 = vmul.f32 %v1881_v53, %v575_v11 }
 0x12b   : > { %v587_v13 = vadd.f32 %v1882_v57, %v581_v12 }
 0x12d   : > { %1781 = vmatmul.msk.f32.gmra.mxu0 %vm501_vm2, %v587_v13 }
 0x19a   : > { %v622_v15 = vpop.f32.mrf.mxu0 }
 0x19b   : > { %v623_v17 = vadd.f32 %v1883_v14, %v622_v15 }
 0x19d   : > { %637 = vrot.lane.b32.xlu2 %v623_v17, %s1968_s24  ;;  %v631_v24 = vmul.f32 0.35355338, %v623_v17 }
 0x1a2   : > { %v625_v18 = vpop.f32.mrf.mxu0 }
 0x1a3   : > { %v626_v19 = vadd.f32 %v1883_v14, %v625_v18 }
 0x1a5   : > { %813 = vrot.lane.b32.xlu2 %v626_v19, %s1969_s25  ;;  %639 = vrot.lane.b32.xlu1 %v626_v19, %s1968_s24  ;;  %v2129_v20 = vpack.i.bf16 %v623_v17, %v626_v19  ;;  %v632_v23 = vmul.f32 0.35355338, %v626_v19 }
 0x1aa   : > { %v628_v21 = vpop.f32.mrf.mxu0 }
 0x1ab   : > { %v2131_v22 = vadd.f32 %v1883_v14, %v628_v21 }
 0x1ad   : > { %811 = vrot.lane.b32.xlu1 %v623_v17, %s1969_s25  ;;  %807 = vrot.lane.b32.xlu2 %v632_v23, %s1970_s26  ;;  %v633_v25 = vmul.f32 0.35355338, %v2131_v22 }
 0x1ae   : > { %641 = vrot.lane.b32.xlu0 %v2131_v22, %s1968_s24  ;;  %s1980_s24 = smov 16  }
 0x1b5   : > { %1147 = vrot.lane.b32.xlu2 %v626_v19, %s1971_s27  ;;  %1149 = vrot.lane.b32.xlu1 %v2131_v22, %s1971_s27 }
 0x1b6   : > { %815 = vrot.lane.b32.xlu0 %v2131_v22, %s1969_s25  ;;  %s1981_s25 = smov 24  }
 0x1bd   : > { %1139 = vrot.lane.b32.xlu2 %v631_v24, %s1972_s28  ;;  %1145 = vrot.lane.b32.xlu1 %v623_v17, %s1971_s27 }
 0x1be   : > { %805 = vrot.lane.b32.xlu0 %v631_v24, %s1970_s26 }
 0x1c5   : > { %1141 = vrot.lane.b32.xlu2 %v632_v23, %s1972_s28  ;;  %980 = vrot.lane.b32.xlu1 %v626_v19, %s1973_s15 }
 0x1c6   : > { %809 = vrot.lane.b32.xlu0 %v633_v25, %s1970_s26 }
 0x1cd   : > { %974 = vrot.lane.b32.xlu2 %v632_v23, %s1974_s16  ;;  %972 = vrot.lane.b32.xlu1 %v631_v24, %s1974_s16 }
 0x1ce   : > { %982 = vrot.lane.b32.xlu0 %v2131_v22, %s1973_s15 }
 0x1d5   : > { %718 = vrot.lane.b32.xlu2 %v2131_v22, %s1975_s17  ;;  %976 = vrot.lane.b32.xlu1 %v633_v25, %s1974_s16 }
 0x1d6   : > { %978 = vrot.lane.b32.xlu0 %v623_v17, %s1973_s15 }
 0x1dd   : > { %1861 = vrot.lane.b32.xlu2 %v2129_v20, %s1975_s17  ;;  %s481_s17 = scalar_lea.vmem %s2486_s14, %s1836_s18 }
 0x1de   : > { %1143 = vrot.lane.b32.xlu0 %v633_v25, %s1972_s28 }
 0x1e5   : > { %1220 = vrot.lane.b32.xlu2 %v2131_v22, %s1976_s19 }
 0x1ed   : > { %1871 = vrot.lane.b32.xlu2 %v2129_v20, %s1976_s19 }
 0x1f5   : > { %1053 = vrot.lane.b32.xlu2 %v2131_v22, %s1977_s20 }
 0x1f7   : > { %v638_v26 = vpop.permute.xlu2 %637 }
 0x1ff   : > { %v814_v27 = vpop.permute.xlu2 %813 }
 0x207   : > { %v808_v28 = vpop.permute.xlu2 %807 }
 0x20f   : > { %v1148_v29 = vpop.permute.xlu2 %1147 }
 0x217   : > { %v1140_v30 = vpop.permute.xlu2 %1139  ;;  %v640_v31 = vpop.permute.xlu1 %639 }
 0x21f   : > { %v1142_v32 = vpop.permute.xlu2 %1141  ;;  %v812_v34 = vpop.permute.xlu1 %811 }
 0x220   : > { %v642_v33 = vpop.permute.xlu0 %641 }
 0x221   : > { %1782 = vmatpush.xpose.msk.msra.mxu1 %vm643_vm13, %v642_v33 }
 0x225   : > { %1783 = vmatpush.xpose.msk.msra.mxu1 %vm643_vm13, %v640_v31 }
 0x227   : > { %v975_v35 = vpop.permute.xlu2 %974  ;;  %v1150_v37 = vpop.permute.xlu1 %1149 }
 0x228   : > { %v816_v36 = vpop.permute.xlu0 %815 }
 0x229   : > { %1784 = vmatpush.xpose.msk.msra.mxu1 %vm643_vm13, %v638_v26  ;;  %1792 = vmatpush.xpose.msk.msra.mxu3 %vm643_vm13, %v816_v36 }
 0x22c   : > { %1785 = vmatmul.msk.f32.vlgmr.msra.gmra.mxu1 %vm643_vm13, %v631_v24 }
 0x22d   : > { %1793 = vmatpush.xpose.msk.msra.mxu3 %vm643_vm13, %v814_v27 }
 0x22f   : > { %v719_v38 = vpop.permute.xlu2 %718  ;;  %v1146_v40 = vpop.permute.xlu1 %1145 }
 0x230   : > { %v806_v39 = vpop.permute.xlu0 %805  ;;  %1788 = vmatpush.msk.msra.mxu2 %vm731_vm14, %v719_v38 }
 0x231   : > { %1794 = vmatpush.xpose.msk.msra.mxu3 %vm643_vm13, %v812_v34 }
 0x234   : > { %1786 = vmatmul.msk.f32.gmra.mxu1 %vm643_vm13, %v632_v23  ;;  %1795 = vmatmul.msk.f32.vlgmr.msra.gmra.mxu3 %vm643_vm13, %v806_v39 }
 0x235   : > { %1812 = vmatpush.xpose.msk.msrb.mxu3 %vm643_vm13, %v1150_v37 }
 0x237   : > { %v1862_v41 = vpop.permute.xlu2 %1861  ;;  %v981_v47 = vpop.permute.xlu1 %980 }
 0x238   : > { %v810_v42 = vpop.permute.xlu0 %809  ;;  %v1863_v43 = vunpack.i.l.bf16 %v1862_v41  ;;  %v1864_v44 = vunpack.i.h.bf16 %v1862_v41 }
 0x239   : > { %1813 = vmatpush.xpose.msk.msrb.mxu3 %vm643_vm13, %v1148_v29 }
 0x23a   : > { %748 = vmatpush.msra.mxu2 %v1863_v43 }
 0x23c   : > { %1787 = vmatmul.msk.f32.gmra.mxu1 %vm643_vm13, %v633_v25  ;;  %1796 = vmatmul.msk.f32.gmra.mxu3 %vm643_vm13, %v808_v28 }
 0x23d   : > { %1814 = vmatpush.xpose.msk.msrb.mxu3 %vm643_vm13, %v1146_v40  ;;  %749 = vmatpush.msra.mxu2 %v1864_v44 }
 0x23f   : > { %v2159_v45 = vpop.permute.xlu2 %1220  ;;  %v973_v50 = vpop.permute.xlu1 %972 }
 0x240   : > { %v983_v46 = vpop.permute.xlu0 %982 }
 0x241   : > { %1802 = vmatpush.xpose.msk.msrb.mxu0 %vm643_vm13, %v983_v46 }
 0x244   : > { %1797 = vmatmul.msk.f32.gmra.mxu3 %vm643_vm13, %v810_v42 }
 0x245   : > { %1803 = vmatpush.xpose.msk.msrb.mxu0 %vm643_vm13, %v981_v47 }
 0x247   : > { %v2164_v48 = vpop.permute.xlu2 %1871  ;;  %v977_v52 = vpop.permute.xlu1 %976 }
 0x248   : > { %v979_v49 = vpop.permute.xlu0 %978  ;;  %v1873_v46 = vunpack.i.l.bf16 %v2164_v48 }
 0x249   : > { %1804 = vmatpush.xpose.msk.msrb.mxu0 %vm643_vm13, %v979_v49 }
 0x24c   : > { %1805 = vmatmul.msk.f32.vlgmr.msrb.gmra.mxu0 %vm643_vm13, %v973_v50  ;;  %1815 = vmatmul.msk.f32.vlgmr.msrb.gmra.mxu3 %vm643_vm13, %v1140_v30  ;;  %v1874_v50 = vunpack.i.h.bf16 %v2164_v48 }
 0x24f   : > { %v1054_v51 = vpop.permute.xlu2 %1053 }
 0x250   : > { %1808 = vmatpush.msk.msrb.mxu1 %vm731_vm14, %v1054_v51  ;;  %v1144_v53 = vpop.permute.xlu0 %1143 }
 0x254   : > { %1806 = vmatmul.msk.f32.gmra.mxu0 %vm643_vm13, %v975_v35  ;;  %1816 = vmatmul.msk.f32.gmra.mxu3 %vm643_vm13, %v1142_v32 }
 0x25c   : > { %1807 = vmatmul.msk.f32.gmra.mxu0 %vm643_vm13, %v977_v52  ;;  %1817 = vmatmul.msk.f32.gmra.mxu3 %vm643_vm13, %v1144_v53 }
 0x2a9   : > { %v676_v54 = vpop.f32.mrf.mxu1 }
 0x2aa   : > { %v686_v55 = vsel %vm685_vm15, %v676_v54, -inf }
 0x2ab   : > { %687 = vmax.xlane.f32.xlu0 %v686_v55 }
 0x2b1   : > { %v679_v56 = vpop.f32.mrf.mxu1 }
 0x2b2   : > { %v689_v57 = vsel %vm685_vm15, %v679_v56, -inf }
 0x2b3   : > { %690 = vmax.xlane.f32.xlu1 %v689_v57 }
 0x2b7   : > { %v846_v58 = vpop.f32.mrf.mxu3 }
 0x2b8   : > { %v855_v59 = vsel %vm685_vm15, %v846_v58, -inf }
 0x2b9   : > { %v682_v60 = vpop.f32.mrf.mxu1  ;;  %856 = vmax.xlane.f32.xlu0 %v855_v59 }
 0x2ba   : > { %v693_v61 = vsel %vm692_vm0, %v682_v60, -inf }
 0x2bb   : > { %694 = vmax.xlane.f32.xlu2 %v693_v61 }
 0x2bf   : > { %v2178_v62 = vpop.f32.mrf.mxu3 }
 0x2c0   : > { %v858_v63 = vsel %vm685_vm15, %v2178_v62, -inf }
 0x2c1   : > { %859 = vmax.xlane.f32.xlu0 %v858_v63 }
 0x2c7   : > { %v2182_v0 = vpop.f32.mrf.mxu3 }
 0x2c8   : > { %v861_v1 = vsel %vm692_vm0, %v2182_v0, -inf }
 0x2c9   : > { %862 = vmax.xlane.f32.xlu2 %v861_v1  ;;  %v2194_v4 = vpop.f32.mrf.mxu0 }
 0x2ca   : > { %v1022_v6 = vsel %vm685_vm15, %v2194_v4, -inf }
 0x2cc   : > { %886 = vrot.lane.b32.xlu1 %v2131_v22, %s1978_s22 }
 0x2cf   : > { %v2187_v2 = vpop.f32.mrf.mxu3 }
 0x2d0   : > { %v1189_v3 = vsel %vm685_vm15, %v2187_v2, -inf }
 0x2d1   : > { %1190 = vmax.xlane.f32.xlu2 %v1189_v3  ;;  %v2198_v7 = vpop.f32.mrf.mxu0 }
 0x2d2   : > { %v1025_v9 = vsel %vm685_vm15, %v2198_v7, -inf }
 0x2d5   : > { %1866 = vrot.lane.b32.xlu0 %v2129_v20, %s1978_s22 }
 0x2d7   : > { %v2200_v8 = vpop.f32.mrf.mxu3 }
 0x2d8   : > { %v1192_v10 = vsel %vm685_vm15, %v2200_v8, -inf }
 0x2d9   : > { %v2206_v11 = vpop.f32.mrf.mxu0 }
 0x2da   : > { %v1028_v13 = vsel %vm692_vm0, %v2206_v11, -inf }
 0x2df   : > { %v2208_v12 = vpop.f32.mrf.mxu3 }
 0x2e0   : > { %v1195_v14 = vsel %vm692_vm0, %v2208_v12, -inf }
 0x2e9   : > { %1876 = vrot.lane.b32.xlu2 %v2129_v20, %s1977_s20 }
 0x2f6   : > { %1023 = vmax.xlane.f32.xlu1 %v1022_v6 }
 0x2fe   : > { %1026 = vmax.xlane.f32.xlu1 %v1025_v9 }
 0x2ff   : > { %1193 = vmax.xlane.f32.xlu0 %v1192_v10 }
 0x306   : > { %1029 = vmax.xlane.f32.xlu1 %v1028_v13 }
 0x307   : > { %1196 = vmax.xlane.f32.xlu0 %v1195_v14 }
 0x31e   : > { %v688_v15 = vpop.xlane.xlu0 %687 }
 0x31f   : > { %v696_v17 = vsub.f32 %v676_v54, %v688_v15 }
 0x321   : > { %v699_v18 = vmul.f32 1.442695, %v696_v17 }
 0x323   : > { %1897 = vpow2.f32 %v699_v18 }
 0x326   : > { %v691_v19 = vpop.xlane.xlu1 %690 }
 0x327   : > { %v697_v20 = vsub.f32 %v679_v56, %v691_v19 }
 0x329   : > { %v2214_v21 = vpop.eup %1897  ;;  %v701_v22 = vmul.f32 1.442695, %v697_v20 }
 0x32a   : > { %1789 = vmatmul.msk.f32.vlgmr.msra.gmra.mxu2 %vm685_vm15, %v2214_v21  ;;  %v705_v20 = vsel %vm685_vm15, %v2214_v21, 0.0 }
 0x32b   : > { %1899 = vpow2.f32 %v701_v22 }
 0x32c   : > { %v857_v23 = vpop.xlane.xlu0 %856 }
 0x32d   : > { %v864_v24 = vsub.f32 %v846_v58, %v857_v23 }
 0x32e   : > { %v695_v25 = vpop.xlane.xlu2 %694 }
 0x32f   : > { %v867_v26 = vmul.f32 1.442695, %v864_v24  ;;  %v698_v27 = vsub.f32 %v682_v60, %v695_v25 }
 0x331   : > { %v2218_v28 = vpop.eup %1899  ;;  %1901 = vpow2.f32 %v867_v26  ;;  %v703_v29 = vmul.f32 1.442695, %v698_v27 }
 0x332   : > { %1790 = vmatmul.msk.f32.gmra.mxu2 %vm685_vm15, %v2218_v28  ;;  %v708_v22 = vsel %vm685_vm15, %v2218_v28, 0.0 }
 0x333   : > { %1903 = vpow2.f32 %v703_v29 }
 0x334   : > { %v860_v35 = vpop.xlane.xlu0 %859 }
 0x335   : > { %v865_v38 = vsub.f32 %v2178_v62, %v860_v35 }
 0x337   : > { %v1902_v30 = vpop.eup %1901  ;;  %v869_v41 = vmul.f32 1.442695, %v865_v38 }
 0x338   : > { %v873_v31 = vsel %vm685_vm15, %v1902_v30, 0.0 }
 0x339   : > { %v1904_v32 = vpop.eup %1903  ;;  %874 = vadd.xlane.f32.xlu2 %v873_v31  ;;  %1905 = vpow2.f32 %v869_v41 }
 0x33a   : > { %1791 = vmatmul.msk.f32.gmra.mxu2 %vm685_vm15, %v1904_v32  ;;  %v711_v36 = vsel %vm692_vm0, %v1904_v32, 0.0 }
 0x33c   : > { %v863_v33 = vpop.xlane.xlu2 %862 }
 0x33d   : > { %v866_v47 = vsub.f32 %v2182_v0, %v863_v33 }
 0x33e   : > { %v887_v34 = vpop.permute.xlu1 %886 }
 0x33f   : > { %1798 = vmatpush.msk.msrb.mxu2 %vm731_vm14, %v887_v34  ;;  %v871_v51 = vmul.f32 1.442695, %v866_v47  ;;  %v1906_v52 = vpop.eup %1905 }
 0x340   : > { %v876_v13 = vsel %vm685_vm15, %v1906_v52, 0.0 }
 0x341   : > { %712 = vadd.xlane.f32.xlu2 %v711_v36  ;;  %1907 = vpow2.f32 %v871_v51 }
 0x344   : > { %v1191_v37 = vpop.xlane.xlu2 %1190 }
 0x345   : > { %v1198_v53 = vsub.f32 %v2187_v2, %v1191_v37 }
 0x347   : > { %v1867_v39 = vpop.permute.xlu0 %1866  ;;  %v1201_v54 = vmul.f32 1.442695, %v1198_v53  ;;  %v1908_v55 = vpop.eup %1907 }
 0x348   : > { %v1868_v40 = vunpack.i.l.bf16 %v1867_v39  ;;  %v1869_v42 = vunpack.i.h.bf16 %v1867_v39  ;;  %v879_v17 = vsel %vm692_vm0, %v1908_v55, 0.0 }
 0x349   : > { %1909 = vpow2.f32 %v1201_v54 }
 0x34a   : > { %915 = vmatpush.msrb.mxu2 %v1868_v40 }
 0x34c   : > { %v1877_v43 = vpop.permute.xlu2 %1876  ;;  %916 = vmatpush.msrb.mxu2 %v1869_v42 }
 0x34d   : > { %1799 = vmatmul.msk.f32.vlgmr.msrb.gmra.mxu2 %vm685_vm15, %v1902_v30  ;;  %v1878_v44 = vunpack.i.l.bf16 %v1877_v43  ;;  %v1879_v49 = vunpack.i.h.bf16 %v1877_v43 }
 0x34e   : > { %1818 = vmatpush.msk.msra.mxu2 %vm731_vm14, %v2159_v45 }
 0x34f   : > { %1082 = vmatpush.msrb.mxu1 %v1878_v44  ;;  %v1910_v45 = vpop.eup %1909 }
 0x350   : > { %1249 = vmatpush.msra.mxu2 %v1873_v46  ;;  %v1207_v19 = vsel %vm685_vm15, %v1910_v45, 0.0 }
 0x351   : > { %1083 = vmatpush.msrb.mxu1 %v1879_v49 }
 0x352   : > { %1250 = vmatpush.msra.mxu2 %v1874_v50 }
 0x355   : > { %1800 = vmatmul.msk.f32.gmra.mxu2 %vm685_vm15, %v1906_v52 }
 0x35d   : > { %1801 = vmatmul.msk.f32.gmra.mxu2 %vm685_vm15, %v1908_v55 }
 0x365   : > { %1819 = vmatmul.msk.f32.vlgmr.msra.gmra.mxu2 %vm685_vm15, %v1910_v45 }
 0x369   : > { %v1024_v56 = vpop.xlane.xlu1 %1023 }
 0x36a   : > { %v1031_v48 = vsub.f32 %v2194_v4, %v1024_v56 }
 0x36c   : > { %v1034_v57 = vmul.f32 1.442695, %v1031_v48 }
 0x36e   : > { %1911 = vpow2.f32 %v1034_v57 }
 0x371   : > { %v1027_v58 = vpop.xlane.xlu1 %1026 }
 0x372   : > { %v1032_v59 = vsub.f32 %v2198_v7, %v1027_v58  ;;  %v1194_v60 = vpop.xlane.xlu0 %1193 }
 0x373   : > { %v1199_v61 = vsub.f32 %v2200_v8, %v1194_v60 }
 0x374   : > { %v1912_v62 = vpop.eup %1911  ;;  %v1036_v63 = vmul.f32 1.442695, %v1032_v59 }
 0x375   : > { %v1203_v0 = vmul.f32 1.442695, %v1199_v61  ;;  %1809 = vmatmul.msk.f32.vlgmr.msrb.gmra.mxu1 %vm685_vm15, %v1912_v62  ;;  %v1040_v1 = vsel %vm685_vm15, %v1912_v62, 0.0 }
 0x376   : > { %1913 = vpow2.f32 %v1036_v63  ;;  %1041 = vadd.xlane.f32.xlu0 %v1040_v1 }
 0x377   : > { %1915 = vpow2.f32 %v1203_v0 }
 0x379   : > { %v1030_v2 = vpop.xlane.xlu1 %1029 }
 0x37a   : > { %v1033_v3 = vsub.f32 %v2206_v11, %v1030_v2  ;;  %v1197_v4 = vpop.xlane.xlu0 %1196 }
 0x37b   : > { %v1200_v6 = vsub.f32 %v2208_v12, %v1197_v4 }
 0x37c   : > { %v1914_v7 = vpop.eup %1913  ;;  %v1038_v9 = vmul.f32 1.442695, %v1033_v3 }
 0x37d   : > { %v1916_v10 = vpop.eup %1915  ;;  %v1205_v8 = vmul.f32 1.442695, %v1200_v6  ;;  %1810 = vmatmul.msk.f32.gmra.mxu1 %vm685_vm15, %v1914_v7  ;;  %v1043_v14 = vsel %vm685_vm15, %v1914_v7, 0.0 }
 0x37e   : > { %1917 = vpow2.f32 %v1038_v9  ;;  %877 = vadd.xlane.f32.xlu0 %v876_v13  ;;  %1044 = vadd.xlane.f32.xlu1 %v1043_v14  ;;  %v1210_v18 = vsel %vm685_vm15, %v1916_v10, 0.0 }
 0x37f   : > { %1919 = vpow2.f32 %v1205_v8  ;;  %1820 = vmatmul.msk.f32.gmra.mxu2 %vm685_vm15, %v1916_v10 }
 0x384   : > { %v1918_v11 = vpop.eup %1917 }
 0x385   : > { %v1920_v15 = vpop.eup %1919  ;;  %1811 = vmatmul.msk.f32.gmra.mxu1 %vm685_vm15, %v1918_v11  ;;  %v1046_v12 = vsel %vm692_vm0, %v1918_v11, 0.0 }
 0x386   : > { %1047 = vadd.xlane.f32.xlu0 %v1046_v12  ;;  %880 = vadd.xlane.f32.xlu1 %v879_v17  ;;  %v1213_v23 = vsel %vm692_vm0, %v1920_v15, 0.0 }
 0x387   : > { %1821 = vmatmul.msk.f32.gmra.mxu2 %vm685_vm15, %v1920_v15 }
 0x38e   : > { %1211 = vadd.xlane.f32.xlu0 %v1210_v18  ;;  %1208 = vadd.xlane.f32.xlu1 %v1207_v19 }
 0x396   : > { %706 = vadd.xlane.f32.xlu0 %v705_v20  ;;  %709 = vadd.xlane.f32.xlu1 %v708_v22 }
 0x39e   : > { %1214 = vadd.xlane.f32.xlu1 %v1213_v23 }
 0x3ac   : > { %v875_v24 = vpop.xlane.xlu2 %874 }
 0x3ad   : > { %1921 = vrcp.f32 %v875_v24  ;;  %v2259_v25 = vpop.f32.mrf.mxu2  ;;  %v938_v28 = vand.u32 2147483648, %v875_v24  ;;  %vm932_vm4 = vweird.f32 %v875_v24  ;;  %v936_v33 = vand.u32 2147483647, %v875_v24 }
 0x3af   : > { %v939_v35 = vor.u32 1.1754944e-38, %v938_v28  ;;  %vm937_vm6 = vcmp.eq.f32.partialorder %v936_v33, 8.507059e+37 }
 0x3b3   : > { %v1922_v26 = vpop.eup %1921 }
 0x3b4   : > { %v928_v27 = vmul.f32 %v1922_v26, %v875_v24  ;;  %vm933_vm3 = vweird.f32 %v1922_v26 }
 0x3b5   : > { %v2261_v29 = vpop.f32.mrf.mxu2  ;;  %vm934_vm5 = vmor %vm932_vm4, %vm933_vm3 }
 0x3b6   : > { %v929_v30 = vsub.f32 1.0, %v928_v27 }
 0x3b8   : > { %v930_v31 = vmul.f32 %v1922_v26, %v929_v30 }
 0x3ba   : > { %v931_v21 = vadd.f32 %v1922_v26, %v930_v31 }
 0x3bc   : > { %v935_v34 = vsel %vm934_vm5, %v1922_v26, %v931_v21 }
 0x3bd   : > { %v2263_v32 = vpop.f32.mrf.mxu2  ;;  %v940_v37 = vsel %vm937_vm6, %v939_v35, %v935_v34 }
 0x3d0   : > { %v918_v36 = vpop.f32.mrf.mxu2 }
 0x3d1   : > { %v969_v38 = vmul.f32 %v940_v37, %v918_v36 }
 0x3d3   : > { %1309 = vrot.lane.b32.xlu0 %v969_v38, %s1979_s23 }
 0x3d8   : > { %v921_v50 = vpop.f32.mrf.mxu2 }
 0x3e0   : > { %v2276_v7 = vpop.f32.mrf.mxu2 }
 0x3e9   : > { %v1042_v39 = vpop.xlane.xlu0 %1041 }
 0x3ea   : > { %1923 = vrcp.f32 %v1042_v39  ;;  %v1105_v46 = vand.u32 2147483648, %v1042_v39  ;;  %v1103_v49 = vand.u32 2147483647, %v1042_v39  ;;  %vm1099_vm8 = vweird.f32 %v1042_v39 }
 0x3ec   : > { %v1106_v54 = vor.u32 1.1754944e-38, %v1105_v46  ;;  %vm1104_vm10 = vcmp.eq.f32.partialorder %v1103_v49, 8.507059e+37 }
 0x3f0   : > { %v1924_v40 = vpop.eup %1923 }
 0x3f1   : > { %v1095_v41 = vmul.f32 %v1924_v40, %v1042_v39  ;;  %v2266_v42 = vpop.xlane.xlu0 %877  ;;  %v1045_v43 = vpop.xlane.xlu1 %1044  ;;  %vm1100_vm7 = vweird.f32 %v1924_v40 }
 0x3f2   : > { %1925 = vrcp.f32 %v2266_v42  ;;  %v1085_v51 = vpop.f32.mrf.mxu1  ;;  %vm1101_vm9 = vmor %vm1099_vm8, %vm1100_vm7  ;;  %v1119_v0 = vand.u32 2147483648, %v1045_v43  ;;  %v1117_v2 = vand.u32 2147483647, %v1045_v43  ;;  %vm946_vm14 = vweird.f32 %v2266_v42 }
 0x3f3   : > { %v1096_v44 = vsub.f32 1.0, %v1095_v41  ;;  %1927 = vrcp.f32 %v1045_v43  ;;  %v952_v3 = vand.u32 2147483648, %v2266_v42  ;;  %vm1113_vm15 = vweird.f32 %v1045_v43 }
 0x3f4   : > { %v950_v13 = vand.u32 2147483647, %v2266_v42  ;;  %v1120_v11 = vor.u32 1.1754944e-38, %v1119_v0  ;;  %vm1118_vm4 = vcmp.eq.f32.partialorder %v1117_v2, 8.507059e+37 }
 0x3f5   : > { %v1097_v47 = vmul.f32 %v1924_v40, %v1096_v44  ;;  %v953_v19 = vor.u32 1.1754944e-38, %v952_v3 }
 0x3f6   : > { %vm951_vm5 = vcmp.eq.f32.partialorder %v950_v13, 8.507059e+37 }
 0x3f7   : > { %v1098_v52 = vadd.f32 %v1924_v40, %v1097_v47 }
 0x3f8   : > { %v1926_v53 = vpop.eup %1925 }
 0x3f9   : > { %v1928_v55 = vpop.eup %1927  ;;  %v942_v45 = vmul.f32 %v1926_v53, %v2266_v42  ;;  %v1102_v56 = vsel %vm1101_vm9, %v1924_v40, %v1098_v52  ;;  %v1048_v48 = vpop.xlane.xlu0 %1047  ;;  %vm947_vm11 = vweird.f32 %v1926_v53 }
 0x3fa   : > { %v2270_v57 = vpop.xlane.xlu1 %880  ;;  %v1109_v58 = vmul.f32 %v1928_v55, %v1045_v43  ;;  %v1107_v59 = vsel %vm1104_vm10, %v1106_v54, %v1102_v56  ;;  %1929 = vrcp.f32 %v1048_v48  ;;  %vm1114_vm12 = vweird.f32 %v1928_v55  ;;  %v1088_v9 = vpop.f32.mrf.mxu1  ;;  %vm2278_vm0 = vmor %vm946_vm14, %vm947_vm11 }
 0x3fb   : > { %v943_v60 = vsub.f32 1.0, %v942_v45  ;;  %v1136_v61 = vmul.f32 %v1107_v59, %v1085_v51  ;;  %1931 = vrcp.f32 %v2270_v57  ;;  %vm1115_vm3 = vmor %vm1113_vm15, %vm1114_vm12  ;;  %v1133_v26 = vand.u32 2147483648, %v1048_v48  ;;  %v1252_v40 = vpop.f32.mrf.mxu2 }
 0x3fc   : > { %v1110_v62 = vsub.f32 1.0, %v1109_v58  ;;  %v1131_v30 = vand.u32 2147483647, %v1048_v48  ;;  %vm1127_vm7 = vweird.f32 %v1048_v48  ;;  %v966_v3 = vand.u32 2147483648, %v2270_v57 }
 0x3fd   : > { %v944_v63 = vmul.f32 %v1926_v53, %v943_v60  ;;  %1321 = vrot.lane.b32.xlu1 %v1136_v61, %s1980_s24  ;;  %v1134_v35 = vor.u32 1.1754944e-38, %v1133_v26 }
 0x3fe   : > { %v1111_v1 = vmul.f32 %v1928_v55, %v1110_v62  ;;  %vm1132_vm9 = vcmp.eq.f32.partialorder %v1131_v30, 8.507059e+37  ;;  %v967_v13 = vor.u32 1.1754944e-38, %v966_v3  ;;  %v1354_v30 = vld [vmem:[%s2478_s6 + $0x8] sm:$0xff] }
 0x3ff   : > { %v945_v4 = vadd.f32 %v1926_v53, %v944_v63 }
 0x400   : > { %v1930_v6 = vpop.eup %1929  ;;  %v1112_v10 = vadd.f32 %v1928_v55, %v1111_v1 }
 0x401   : > { %v1123_v14 = vmul.f32 %v1930_v6, %v1048_v48  ;;  %v1212_v15 = vpop.xlane.xlu0 %1211  ;;  %v949_v18 = vsel %vm2278_vm0, %v1926_v53, %v945_v4  ;;  %v2288_v23 = vpop.eup %1931  ;;  %vm1128_vm6 = vweird.f32 %v1930_v6 }
 0x402   : > { %v2283_v12 = vpop.xlane.xlu1 %1208  ;;  %v1116_v17 = vsel %vm1115_vm3, %v1928_v55, %v1112_v10  ;;  %1933 = vrcp.f32 %v1212_v15  ;;  %v954_v31 = vsel %vm951_vm5, %v953_v19, %v949_v18  ;;  %v956_v28 = vmul.f32 %v2288_v23, %v2270_v57  ;;  %vm1129_vm8 = vmor %vm1127_vm7, %vm1128_vm6  ;;  %v1091_v42 = vpop.f32.mrf.mxu1 }
 0x403   : > { %v1124_v20 = vsub.f32 1.0, %v1123_v14  ;;  %v1121_v22 = vsel %vm1118_vm4, %v1120_v11, %v1116_v17  ;;  %1935 = vrcp.f32 %v2283_v12  ;;  %v970_v21 = vmul.f32 %v954_v31, %v921_v50  ;;  %v1255_v61 = vpop.f32.mrf.mxu2 }
 0x404   : > { %v1137_v24 = vmul.f32 %v1121_v22, %v1088_v9  ;;  %v957_v44 = vsub.f32 1.0, %v956_v28  ;;  %v1286_v50 = vand.u32 2147483648, %v1212_v15  ;;  %v1284_v52 = vand.u32 2147483647, %v1212_v15 }
 0x405   : > { %v1125_v27 = vmul.f32 %v1930_v6, %v1124_v20  ;;  %1311 = vrot.lane.b32.xlu0 %v970_v21, %s1979_s23  ;;  %v1272_v55 = vand.u32 2147483648, %v2283_v12  ;;  %vm1280_vm11 = vweird.f32 %v1212_v15  ;;  %v1270_v58 = vand.u32 2147483647, %v2283_v12  ;;  %v1353_v21 = vld [vmem:[%s2478_s6] sm:$0xff] }
 0x406   : > { %1323 = vrot.lane.b32.xlu1 %v1137_v24, %s1980_s24  ;;  %v958_v54 = vmul.f32 %v2288_v23, %v957_v44  ;;  %v1287_v56 = vor.u32 1.1754944e-38, %v1286_v50  ;;  %vm1285_vm15 = vcmp.eq.f32.partialorder %v1284_v52, 8.507059e+37  ;;  %vm1266_vm0 = vweird.f32 %v2283_v12 }
 0x407   : > { %v1126_v33 = vadd.f32 %v1930_v6, %v1125_v27  ;;  %v1273_v63 = vor.u32 1.1754944e-38, %v1272_v55  ;;  %vm1271_vm4 = vcmp.eq.f32.partialorder %v1270_v58, 8.507059e+37  ;;  %vm961_vm5 = vweird.f32 %v2288_v23  ;;  %v1356_v27 = vld [vmem:[%s2478_s6 + $0x18] sm:$0xff] }
 0x408   : > { %v1934_v34 = vpop.eup %1933  ;;  %v959_v2 = vadd.f32 %v2288_v23, %v958_v54  ;;  %vm960_vm6 = vweird.f32 %v2270_v57  ;;  %v964_v9 = vand.u32 2147483647, %v2270_v57  ;;  %1382 = vmatpush.msra.mxu0 %v1356_v27 }
 0x409   : > { %v1936_v36 = vpop.eup %1935  ;;  %v1276_v37 = vmul.f32 %v1934_v34, %v1212_v15  ;;  %v1130_v38 = vsel %vm1129_vm8, %v1930_v6, %v1126_v33  ;;  %vm1281_vm10 = vweird.f32 %v1934_v34  ;;  %vm962_vm7 = vmor %vm960_vm6, %vm961_vm5  ;;  %v707_v31 = vpop.xlane.xlu0 %706  ;;  %vm1349_vm5 = vcmask 195584  }
 0x40a   : > { %v2294_v39 = vpop.xlane.xlu1 %709  ;;  %v1262_v41 = vmul.f32 %v1936_v36, %v2283_v12  ;;  %v1135_v43 = vsel %vm1132_vm9, %v1134_v35, %v1130_v38  ;;  %vm1282_vm12 = vmor %vm1280_vm11, %vm1281_vm10  ;;  %vm1267_vm14 = vweird.f32 %v1936_v36  ;;  %v963_v8 = vsel %vm962_vm7, %v2288_v23, %v959_v2 }
 0x40b   : > { %v1277_v46 = vsub.f32 1.0, %v1276_v37  ;;  %v1138_v47 = vmul.f32 %v1135_v43, %v1091_v42  ;;  %vm1268_vm3 = vmor %vm1266_vm0, %vm1267_vm14  ;;  %vm965_vm8 = vcmp.eq.f32.partialorder %v964_v9, 8.507059e+37  ;;  %v1258_v23 = vpop.f32.mrf.mxu2  ;;  %v771_v37 = vand.u32 2147483648, %v707_v31  ;;  %v713_v43 = vpop.xlane.xlu2 %712 }
 0x40c   : > { %v1263_v49 = vsub.f32 1.0, %v1262_v41  ;;  %v968_v15 = vsel %vm965_vm8, %v967_v13, %v963_v8  ;;  %v769_v38 = vand.u32 2147483647, %v707_v31  ;;  %vm779_vm7 = vweird.f32 %v2294_v39 }
 0x40d   : > { %v1278_v51 = vmul.f32 %v1934_v34, %v1277_v46  ;;  %v971_v19 = vmul.f32 %v968_v15, %v2276_v7  ;;  %v1355_v7 = vld [vmem:[%s2478_s6 + $0x10] sm:$0xff]  ;;  %v772_v41 = vor.u32 1.1754944e-38, %v771_v37  ;;  %v799_v8 = vand.u32 2147483648, %v713_v43 }
 0x40e   : > { %v1264_v53 = vmul.f32 %v1936_v36, %v1263_v49  ;;  %1325 = vrot.lane.b32.xlu1 %v1138_v47, %s1980_s24  ;;  %1383 = vmatpush.msra.mxu0 %v1355_v7  ;;  %v797_v13 = vand.u32 2147483647, %v713_v43 }
 0x40f   : > { %v1279_v45 = vadd.f32 %v1934_v34, %v1278_v51 }
 0x410   : > { %v1265_v48 = vadd.f32 %v1936_v36, %v1264_v53  ;;  %1384 = vmatpush.msra.mxu0 %v1354_v30  ;;  %v1957_v30 = vld [vmem:[%s2077_s21 + $0x8] sm:$0xff] }
 0x411   : > { %v1283_v59 = vsel %vm1282_vm12, %v1934_v34, %v1279_v45 }
 0x412   : > { %v1215_v60 = vpop.xlane.xlu1 %1214  ;;  %v1288_v62 = vsel %vm1285_vm15, %v1287_v56, %v1283_v59  ;;  %v1269_v1 = vsel %vm1268_vm3, %v1936_v36, %v1265_v48  ;;  %1385 = vmatpush.msra.mxu0 %v1353_v21  ;;  %vm765_vm15 = vweird.f32 %v707_v31  ;;  %vm770_vm3 = vcmp.eq.f32.partialorder %v769_v38, 8.507059e+37 }
 0x413   : > { %1937 = vrcp.f32 %v1215_v60  ;;  %v1304_v0 = vmul.f32 %v1288_v62, %v1255_v61  ;;  %v1274_v4 = vsel %vm1271_vm4, %v1273_v63, %v1269_v1  ;;  %v1300_v12 = vand.u32 2147483648, %v1215_v60 }
 0x414   : > { %v1303_v6 = vmul.f32 %v1274_v4, %v1252_v40  ;;  %v1298_v18 = vand.u32 2147483647, %v1215_v60  ;;  %vm1294_vm10 = vweird.f32 %v1215_v60  ;;  %1939 = vrcp.f32 %v707_v31 }
 0x415   : > { %1335 = vrot.lane.b32.xlu0 %v1304_v0, %s1981_s25  ;;  %v1301_v22 = vor.u32 1.1754944e-38, %v1300_v12  ;;  %1941 = vrcp.f32 %v2294_v39  ;;  %vm1345_vm4 = vcmask 130048   ;;  %v785_v48 = vand.u32 2147483648, %v2294_v39 }
 0x416   : > { %1333 = vrot.lane.b32.xlu2 %v1303_v6, %s1981_s25  ;;  %vm1299_vm12 = vcmp.eq.f32.partialorder %v1298_v18, 8.507059e+37  ;;  %1943 = vrcp.f32 %v713_v43 }
 0x419   : > { %v1938_v10 = vpop.eup %1937 }
 0x41a   : > { %v1290_v14 = vmul.f32 %v1938_v10, %v1215_v60  ;;  %vm1295_vm9 = vweird.f32 %v1938_v10  ;;  %v1940_v28 = vpop.eup %1939  ;;  %v786_v60 = vor.u32 1.1754944e-38, %v785_v48 }
 0x41b   : > { %vm1296_vm11 = vmor %vm1294_vm10, %vm1295_vm9  ;;  %v761_v33 = vmul.f32 %v1940_v28, %v707_v31  ;;  %vm766_vm14 = vweird.f32 %v1940_v28  ;;  %v1942_v42 = vpop.eup %1941 }
 0x41c   : > { %v1291_v11 = vsub.f32 1.0, %v1290_v14  ;;  %vm767_vm0 = vmor %vm765_vm15, %vm766_vm14  ;;  %v775_v46 = vmul.f32 %v1942_v42, %v2294_v39  ;;  %vm780_vm6 = vweird.f32 %v1942_v42  ;;  %v1944_v58 = vpop.eup %1943  ;;  %vm798_vm14 = vcmp.eq.f32.partialorder %v797_v13, 8.507059e+37 }
 0x41d   : > { %v762_v34 = vsub.f32 1.0, %v761_v33  ;;  %vm781_vm8 = vmor %vm779_vm7, %vm780_vm6  ;;  %v789_v61 = vmul.f32 %v1944_v58, %v713_v43  ;;  %vm794_vm10 = vweird.f32 %v1944_v58 }
 0x41e   : > { %v1292_v17 = vmul.f32 %v1938_v10, %v1291_v11  ;;  %1313 = vrot.lane.b32.xlu2 %v971_v19, %s1979_s23  ;;  %v776_v52 = vsub.f32 1.0, %v775_v46  ;;  %v800_v11 = vor.u32 1.1754944e-38, %v799_v8 }
 0x41f   : > { %v763_v35 = vmul.f32 %v1940_v28, %v762_v34  ;;  %v790_v0 = vsub.f32 1.0, %v789_v61  ;;  %v1958_v34 = vld [vmem:[%s2077_s21 + $0x10] sm:$0x1] }
 0x420   : > { %v1293_v20 = vadd.f32 %v1938_v10, %v1292_v17  ;;  %v777_v45 = vmul.f32 %v1942_v42, %v776_v52 }
 0x421   : > { %v764_v36 = vadd.f32 %v1940_v28, %v763_v35  ;;  %v791_v4 = vmul.f32 %v1944_v58, %v790_v0 }
 0x422   : > { %v1297_v57 = vsel %vm1296_vm11, %v1938_v10, %v1293_v20  ;;  %v778_v56 = vadd.f32 %v1942_v42, %v777_v45  ;;  %vm793_vm11 = vweird.f32 %v713_v43  ;;  %v1480_v45 = vld [vmem:[%s2482_s10 + $0x8] sm:$0xff] }
 0x423   : > { %v1302_v24 = vsel %vm1299_vm12, %v1301_v22, %v1297_v57  ;;  %v768_v40 = vsel %vm767_vm0, %v1940_v28, %v764_v36  ;;  %v792_v10 = vadd.f32 %v1944_v58, %v791_v4  ;;  %vm795_vm12 = vmor %vm793_vm11, %vm794_vm10  ;;  %v1884_v57 = vld [vmem:[%s2479_s7] ss:$0 sm:$0xff] }
 0x424   : > { %v1305_v26 = vmul.f32 %v1302_v24, %v1258_v23  ;;  %v773_v44 = vsel %vm770_vm3, %v772_v41, %v768_v40  ;;  %v782_v59 = vsel %vm781_vm8, %v1942_v42, %v778_v56  ;;  %v1479_v56 = vld [vmem:[%s2482_s10] sm:$0xff] }
 0x425   : > { %v802_v49 = vmul.f32 %v773_v44, %v2259_v25  ;;  %v783_v25 = vand.u32 2147483647, %v2294_v39  ;;  %v796_v14 = vsel %vm795_vm12, %v1944_v58, %v792_v10 }
 0x426   : > { %1337 = vrot.lane.b32.xlu0 %v1305_v26, %s1981_s25 }
 0x427   : > { %vm784_vm9 = vcmp.eq.f32.partialorder %v783_v25, 8.507059e+37 }
 0x428   : > { %v787_v62 = vsel %vm784_vm9, %v786_v60, %v782_v59 }
 0x429   : > { %v803_v1 = vmul.f32 %v787_v62, %v2261_v29  ;;  %v801_v29 = vsel %vm798_vm14, %v800_v11, %v796_v14  ;;  %vm1666_vm14 = vcmask 523264  }
 0x42a   : > { %v804_v12 = vmul.f32 %v801_v29, %v2263_v32 }
 0x445   : > { %v1310_v47 = vpop.permute.xlu0 %1309 }
 0x446   : > { %v1342_v50 = vsel %vm643_vm13, %v802_v49, %v1310_v47 }
 0x46f   : > { %v1322_v51 = vpop.permute.xlu1 %1321 }
 0x470   : > { %v1346_v53 = vsel %vm1345_vm4, %v1342_v50, %v1322_v51  ;;  %v1334_v54 = vpop.permute.xlu2 %1333 }
 0x471   : > { %v1350_v55 = vsel %vm1349_vm5, %v1346_v53, %v1334_v54  ;;  %v1482_v54 = vld [vmem:[%s2482_s10 + $0x18] sm:$0xff] }
 0x472   : > { %1822 = vmatmul.msk.f32.vlgmr.msra.gmra.mxu0 %vm501_vm2, %v1350_v55  ;;  %1508 = vmatpush.msra.mxu1 %v1482_v54  ;;  %v1481_v55 = vld [vmem:[%s2482_s10 + $0x10] sm:$0xff] }
 0x474   : > { %1509 = vmatpush.msra.mxu1 %v1481_v55  ;;  %v1658_v55 = vld [vmem:[%s2484_s12 + $0x20] sm:$0xff] }
 0x476   : > { %1510 = vmatpush.msra.mxu1 %v1480_v45 }
 0x477   : > { %v1312_v63 = vpop.permute.xlu0 %1311 }
 0x478   : > { %v1324_v2 = vpop.permute.xlu1 %1323  ;;  %v1343_v3 = vsel %vm643_vm13, %v803_v1, %v1312_v63  ;;  %v1314_v15 = vpop.permute.xlu2 %1313  ;;  %1511 = vmatpush.msra.mxu1 %v1479_v56  ;;  %v1885_v1 = vld [vmem:[%s2480_s8] ss:$0 sm:$0xff]  ;;  %v1657_v56 = vld [vmem:[%s2484_s12 + $0x18] sm:$0xff] }
 0x479   : > { %v1347_v9 = vsel %vm1345_vm4, %v1343_v3, %v1324_v2  ;;  %v1344_v18 = vsel %vm643_vm13, %v804_v12, %v1314_v15 }
 0x480   : > { %v1326_v17 = vpop.permute.xlu1 %1325 }
 0x481   : > { %v1348_v19 = vsel %vm1345_vm4, %v1344_v18, %v1326_v17 }
 0x487   : > { %v1336_v6 = vpop.permute.xlu0 %1335 }
 0x488   : > { %v1351_v39 = vsel %vm1349_vm5, %v1347_v9, %v1336_v6  ;;  %v1886_v9 = vld [vmem:[%s2481_s9] ss:$0 sm:$0xff] }
 0x489   : > { %1823 = vmatmul.msk.f32.gmra.mxu0 %vm501_vm2, %v1351_v39 }
 0x498   : > { %v1338_v20 = vpop.permute.xlu0 %1337 }
 0x499   : > { %v1352_v22 = vsel %vm1349_vm5, %v1348_v19, %v1338_v20 }
 0x49a   : > { %1824 = vmatmul.msk.f32.gmra.mxu0 %vm501_vm2, %v1352_v22 }
 0x4ef   : > { %v1387_v23 = vpop.f32.mrf.mxu0 }
 0x4f0   : > { %v1388_v24 = vadd.f32 %v1884_v57, %v1387_v23 }
 0x4f2   : > { %v2346_v26 = vadd.f32 %v1388_v24, %v2081_v5 }
 0x4f4   : > { %v1401_v32 = vsel %vm501_vm2, %v2346_v26, 0.0 }
 0x4f5   : > { %1402 = vadd.xlane.f32.xlu2 %v1401_v32 }
 0x506   : > { %v1390_v27 = vpop.f32.mrf.mxu0 }
 0x507   : > { %v1391_v7 = vadd.f32 %v1884_v57, %v1390_v27 }
 0x509   : > { %v2351_v31 = vadd.f32 %v1957_v30, %v1391_v7 }
 0x50b   : > { %v1404_v21 = vsel %vm501_vm2, %v2351_v31, 0.0 }
 0x50c   : > { %1405 = vadd.xlane.f32.xlu1 %v1404_v21 }
 0x517   : > { %v1393_v28 = vpop.f32.mrf.mxu0 }
 0x518   : > { %v1394_v33 = vadd.f32 %v1884_v57, %v1393_v28 }
 0x51a   : > { %v2356_v35 = vadd.f32 %v1958_v34, %v1394_v33 }
 0x51c   : > { %v1407_v5 = vsel %vm508_vm1, %v2356_v35, 0.0 }
 0x51d   : > { %1408 = vadd.xlane.f32.xlu0 %v1407_v5  ;;  %v1887_v5 = vld [vmem:[%s2483_s11] ss:$0 sm:$0xff] }
 0x568   : > { %v1403_v36 = vpop.xlane.xlu2 %1402 }
 0x569   : > { %v1410_v37 = vmul.f32 %v1403_v36, %v2088_v16 }
 0x56b   : > { %v1413_v38 = vsub.f32 %v2346_v26, %v1410_v37 }
 0x56d   : > { %v1416_v40 = vmul.f32 %v1413_v38, %v1413_v38 }
 0x56f   : > { %v1419_v41 = vsel %vm501_vm2, %v1416_v40, 0.0 }
 0x570   : > { %1420 = vadd.xlane.f32.xlu2 %v1419_v41 }
 0x57f   : > { %v1406_v42 = vpop.xlane.xlu1 %1405 }
 0x580   : > { %v1411_v43 = vmul.f32 %v1406_v42, %v2088_v16 }
 0x582   : > { %v1414_v44 = vsub.f32 %v2351_v31, %v1411_v43 }
 0x584   : > { %v1417_v46 = vmul.f32 %v1414_v44, %v1414_v44 }
 0x586   : > { %v1422_v47 = vsel %vm501_vm2, %v1417_v46, 0.0 }
 0x587   : > { %1423 = vadd.xlane.f32.xlu1 %v1422_v47 }
 0x590   : > { %v1409_v49 = vpop.xlane.xlu0 %1408 }
 0x591   : > { %v1412_v50 = vmul.f32 %v1409_v49, %v2088_v16  ;;  %v1660_v49 = vld [vmem:[%s2484_s12 + $0x30] sm:$0xff] }
 0x593   : > { %v2368_v51 = vsub.f32 %v2356_v35, %v1412_v50 }
 0x595   : > { %v1418_v52 = vmul.f32 %v2368_v51, %v2368_v51 }
 0x597   : > { %v1425_v53 = vsel %vm508_vm1, %v1418_v52, 0.0  ;;  %v1659_v52 = vld [vmem:[%s2484_s12 + $0x28] sm:$0xff] }
 0x598   : > { %1426 = vadd.xlane.f32.xlu0 %v1425_v53 }
 0x5e3   : > { %v1421_v48 = vpop.xlane.xlu2 %1420 }
 0x5e4   : > { %v1428_v25 = vmul.f32 %v1421_v48, %v2088_v16 }
 0x5e6   : > { %v1431_v58 = vadd.f32 1e-12, %v1428_v25 }
 0x5e8   : > { %1945 = vrsqrt.f32 %v1431_v58  ;;  %vm1440_vm15 = vweird.f32 %v1431_v58 }
 0x5ee   : > { %v1946_v59 = vpop.eup %1945 }
 0x5ef   : > { %v1435_v60 = vmul.f32 %v1946_v59, %v1431_v58  ;;  %vm1441_vm13 = vweird.f32 %v1946_v59  ;;  %v1656_v58 = vld [vmem:[%s2484_s12 + $0x10] sm:$0xff] }
 0x5f0   : > { %vm1442_vm0 = vmor %vm1440_vm15, %vm1441_vm13 }
 0x5f1   : > { %v1436_v61 = vmul.f32 %v1946_v59, %v1435_v60 }
 0x5f3   : > { %v1437_v62 = vmul.f32 0.5, %v1436_v61 }
 0x5f5   : > { %v1438_v63 = vsub.f32 1.5, %v1437_v62  ;;  %v1655_v62 = vld [vmem:[%s2484_s12 + $0x8] sm:$0xff] }
 0x5f7   : > { %v1439_v0 = vmul.f32 %v1946_v59, %v1438_v63 }
 0x5f9   : > { %v1443_v3 = vsel %vm1442_vm0, %v1946_v59, %v1439_v0 }
 0x5fa   : > { %v1424_v2 = vpop.xlane.xlu1 %1423  ;;  %v1464_v6 = vmul.f32 %v1443_v3, %v1413_v38 }
 0x5fb   : > { %v1429_v4 = vmul.f32 %v1424_v2, %v2088_v16  ;;  %v1654_v2 = vld [vmem:[%s2484_s12] sm:$0xff] }
 0x5fc   : > { %v1470_v10 = vmul.f32 %v1885_v1, %v1464_v6 }
 0x5fd   : > { %v1432_v39 = vadd.f32 1e-12, %v1429_v4 }
 0x5fe   : > { %v1476_v8 = vadd.f32 %v1886_v9, %v1470_v10 }
 0x5ff   : > { %1947 = vrsqrt.f32 %v1432_v39  ;;  %vm1450_vm4 = vweird.f32 %v1432_v39 }
 0x600   : > { %1825 = vmatmul.msk.f32.vlgmr.msra.gmra.mxu1 %vm501_vm2, %v1476_v8 }
 0x605   : > { %v1948_v13 = vpop.eup %1947 }
 0x606   : > { %v1445_v14 = vmul.f32 %v1948_v13, %v1432_v39  ;;  %vm1451_vm3 = vweird.f32 %v1948_v13 }
 0x607   : > { %vm1452_vm5 = vmor %vm1450_vm4, %vm1451_vm3 }
 0x608   : > { %v1446_v11 = vmul.f32 %v1948_v13, %v1445_v14 }
 0x60a   : > { %v1447_v29 = vmul.f32 0.5, %v1446_v11 }
 0x60b   : > { %v1427_v15 = vpop.xlane.xlu0 %1426 }
 0x60c   : > { %v1430_v12 = vmul.f32 %v1427_v15, %v2088_v16  ;;  %v1448_v17 = vsub.f32 1.5, %v1447_v29 }
 0x60e   : > { %v1433_v18 = vadd.f32 1e-12, %v1430_v12  ;;  %v1449_v19 = vmul.f32 %v1948_v13, %v1448_v17 }
 0x610   : > { %1949 = vrsqrt.f32 %v1433_v18  ;;  %v1453_v20 = vsel %vm1452_vm5, %v1948_v13, %v1449_v19  ;;  %vm1460_vm7 = vweird.f32 %v1433_v18 }
 0x611   : > { %v1465_v22 = vmul.f32 %v1453_v20, %v1414_v44  ;;  %v1661_v44 = vld [vmem:[%s2484_s12 + $0x38] sm:$0xff] }
 0x612   : > { %1684 = vmatpush.msra.mxu3 %v1661_v44 }
 0x613   : > { %v1471_v57 = vmul.f32 %v1885_v1, %v1465_v22 }
 0x614   : > { %1685 = vmatpush.msra.mxu3 %v1660_v49 }
 0x615   : > { %v1477_v24 = vadd.f32 %v1886_v9, %v1471_v57 }
 0x616   : > { %v1950_v23 = vpop.eup %1949  ;;  %1686 = vmatpush.msra.mxu3 %v1659_v52 }
 0x617   : > { %v1455_v32 = vmul.f32 %v1950_v23, %v1433_v18  ;;  %1826 = vmatmul.msk.f32.gmra.mxu1 %vm501_vm2, %v1477_v24  ;;  %vm1461_vm6 = vweird.f32 %v1950_v23 }
 0x618   : > { %vm1462_vm8 = vmor %vm1460_vm7, %vm1461_vm6  ;;  %1687 = vmatpush.msra.mxu3 %v1658_v55 }
 0x619   : > { %v1456_v27 = vmul.f32 %v1950_v23, %v1455_v32 }
 0x61a   : > { %1688 = vmatpush.msra.mxu3 %v1657_v56 }
 0x61b   : > { %v1457_v7 = vmul.f32 0.5, %v1456_v27 }
 0x61c   : > { %1689 = vmatpush.msra.mxu3 %v1656_v58 }
 0x61d   : > { %v1458_v30 = vsub.f32 1.5, %v1457_v7 }
 0x61e   : > { %1690 = vmatpush.msra.mxu3 %v1655_v62 }
 0x61f   : > { %v1459_v16 = vmul.f32 %v1950_v23, %v1458_v30 }
 0x620   : > { %1691 = vmatpush.msra.mxu3 %v1654_v2 }
 0x621   : > { %v1463_v21 = vsel %vm1462_vm8, %v1950_v23, %v1459_v16 }
 0x622   : > { %v1466_v28 = vmul.f32 %v1463_v21, %v2368_v51 }
 0x624   : > { %v1472_v33 = vmul.f32 %v1885_v1, %v1466_v28 }
 0x626   : > { %v1478_v34 = vadd.f32 %v1886_v9, %v1472_v33 }
 0x628   : > { %1827 = vmatmul.msk.f32.gmra.mxu1 %vm501_vm2, %v1478_v34 }
 0x67d   : > { %v1513_v36 = vpop.f32.mrf.mxu1 }
 0x67e   : > { %v2401_v37 = vadd.f32 %v1887_v5, %v1513_v36 }
 0x680   : > { %v2404_v38 = vmul.f32 0.70710677, %v2401_v37 }
 0x682   : > { %v1528_v40 = vmul.f32 %v2404_v38, %v2404_v38 }
 0x684   : > { %v1529_v41 = vmin.f32 %v1528_v40, 16.0 }
 0x686   : > { %v1530_v42 = vmul.f32 2.1237322e-06, %v1529_v41  ;;  %v1541_v43 = vmul.f32 3.8918573e-05, %v1529_v41 }
 0x688   : > { %v1531_v46 = vadd.f32 0.00028619796, %v1530_v42  ;;  %v1542_v47 = vadd.f32 0.001143296, %v1541_v43 }
 0x68a   : > { %v1532_v50 = vmul.f32 %v1531_v46, %v1529_v41  ;;  %v1543_v51 = vmul.f32 %v1542_v47, %v1529_v41 }
 0x68c   : > { %v1533_v53 = vadd.f32 0.0036580483, %v1532_v50  ;;  %v1544_v54 = vadd.f32 0.014752088, %v1543_v51 }
 0x68e   : > { %v1545_v45 = vmul.f32 %v1544_v54, %v1529_v41  ;;  %v1534_v48 = vmul.f32 %v1533_v53, %v1529_v41 }
 0x690   : > { %v1546_v25 = vadd.f32 0.112945676, %v1545_v45  ;;  %v1535_v63 = vadd.f32 0.05243302, %v1534_v48  ;;  %v1522_v45 = vmul.f32 0.5, %v2401_v37 }
 0x692   : > { %v1547_v59 = vmul.f32 %v1546_v25, %v1529_v41  ;;  %v1536_v6 = vmul.f32 %v1535_v63, %v1529_v41 }
 0x694   : > { %v1516_v60 = vpop.f32.mrf.mxu1  ;;  %v1548_v0 = vadd.f32 0.4994258, %v1547_v59  ;;  %v1537_v13 = vadd.f32 0.18741608, %v1536_v6 }
 0x695   : > { %v2426_v61 = vadd.f32 %v1887_v5, %v1516_v60 }
 0x696   : > { %v1549_v3 = vmul.f32 %v1548_v0, %v1529_v41  ;;  %v1538_v17 = vmul.f32 %v1537_v13, %v1529_v41 }
 0x697   : > { %v2432_v1 = vmul.f32 0.70710677, %v2426_v61 }
 0x698   : > { %v1550_v9 = vadd.f32 1.0, %v1549_v3  ;;  %v1539_v32 = vadd.f32 1.1283791, %v1538_v17 }
 0x699   : > { %v1568_v4 = vmul.f32 %v2432_v1, %v2432_v1 }
 0x69a   : > { %1951 = vrcp.f32 %v1550_v9  ;;  %v1560_v27 = vand.u32 2147483647, %v1550_v9  ;;  %v1562_v7 = vand.u32 2147483648, %v1550_v9  ;;  %vm1556_vm10 = vweird.f32 %v1550_v9 }
 0x69b   : > { %v1569_v39 = vmin.f32 %v1568_v4, 16.0  ;;  %v1540_v36 = vmul.f32 %v1539_v32, %v2404_v38 }
 0x69c   : > { %v1563_v40 = vor.u32 1.1754944e-38, %v1562_v7  ;;  %vm1561_vm12 = vcmp.eq.f32.partialorder %v1560_v27, 8.507059e+37  ;;  %v1523_v27 = vmul.f32 0.5, %v2426_v61 }
 0x69d   : > { %v1570_v10 = vmul.f32 2.1237322e-06, %v1569_v39  ;;  %v1581_v8 = vmul.f32 3.8918573e-05, %v1569_v39 }
 0x69f   : > { %v1571_v14 = vadd.f32 0.00028619796, %v1570_v10  ;;  %v1582_v11 = vadd.f32 0.001143296, %v1581_v8 }
 0x6a0   : > { %v1952_v12 = vpop.eup %1951 }
 0x6a1   : > { %v1572_v29 = vmul.f32 %v1571_v14, %v1569_v39  ;;  %v1583_v15 = vmul.f32 %v1582_v11, %v1569_v39  ;;  %v1552_v18 = vmul.f32 %v1952_v12, %v1550_v9  ;;  %vm1557_vm9 = vweird.f32 %v1952_v12 }
 0x6a2   : > { %vm1558_vm11 = vmor %vm1556_vm10, %vm1557_vm9 }
 0x6a3   : > { %v1573_v19 = vadd.f32 0.0036580483, %v1572_v29  ;;  %v1584_v20 = vadd.f32 0.014752088, %v1583_v15  ;;  %v1553_v57 = vsub.f32 1.0, %v1552_v18 }
 0x6a5   : > { %v1519_v22 = vpop.f32.mrf.mxu1  ;;  %v1585_v23 = vmul.f32 %v1584_v20, %v1569_v39  ;;  %v1554_v30 = vmul.f32 %v1952_v12, %v1553_v57  ;;  %v1574_v16 = vmul.f32 %v1573_v19, %v1569_v39 }
 0x6a6   : > { %v2439_v24 = vadd.f32 %v1887_v5, %v1519_v22 }
 0x6a7   : > { %v1586_v21 = vadd.f32 0.112945676, %v1585_v23  ;;  %v1555_v33 = vadd.f32 %v1952_v12, %v1554_v30  ;;  %v1575_v42 = vadd.f32 0.05243302, %v1574_v16 }
 0x6a8   : > { %v2442_v28 = vmul.f32 0.70710677, %v2439_v24 }
 0x6a9   : > { %v1587_v34 = vmul.f32 %v1586_v21, %v1569_v39  ;;  %v1559_v41 = vsel %vm1558_vm11, %v1952_v12, %v1555_v33  ;;  %v1576_v53 = vmul.f32 %v1575_v42, %v1569_v39 }
 0x6aa   : > { %v1608_v5 = vmul.f32 %v2442_v28, %v2442_v28  ;;  %v1564_v44 = vsel %vm1561_vm12, %v1563_v40, %v1559_v41 }
 0x6ab   : > { %v1588_v43 = vadd.f32 0.4994258, %v1587_v34  ;;  %v1565_v47 = vmul.f32 %v1564_v44, %v1540_v36  ;;  %v1577_v59 = vadd.f32 0.18741608, %v1576_v53 }
 0x6ac   : > { %v1609_v46 = vmin.f32 %v1608_v5, 16.0 }
 0x6ad   : > { %v1589_v49 = vmul.f32 %v1588_v43, %v1569_v39  ;;  %v1828_v52 = vclamps-f32 %v1565_v47, 1.0  ;;  %v1578_v2 = vmul.f32 %v1577_v59, %v1569_v39 }
 0x6ae   : > { %v1610_v50 = vmul.f32 2.1237322e-06, %v1609_v46  ;;  %v1621_v51 = vmul.f32 3.8918573e-05, %v1609_v46 }
 0x6af   : > { %v1590_v54 = vadd.f32 1.0, %v1589_v49  ;;  %v1648_v56 = vadd.f32 1.0, %v1828_v52  ;;  %v1579_v37 = vadd.f32 1.1283791, %v1578_v2  ;;  %v1524_v49 = vmul.f32 0.5, %v2439_v24 }
 0x6b0   : > { %v1611_v55 = vadd.f32 0.00028619796, %v1610_v50  ;;  %v1622_v38 = vadd.f32 0.001143296, %v1621_v51  ;;  %v1888_v52 = vld [vmem:[%s2485_s13] ss:$0 sm:$0xff] }
 0x6b1   : > { %1953 = vrcp.f32 %v1590_v54  ;;  %v1651_v58 = vmul.f32 %v1648_v56, %v1522_v45  ;;  %v1602_v8 = vand.u32 2147483648, %v1590_v54  ;;  %v1600_v14 = vand.u32 2147483647, %v1590_v54 }
 0x6b2   : > { %v1612_v48 = vmul.f32 %v1611_v55, %v1609_v46  ;;  %v1623_v25 = vmul.f32 %v1622_v38, %v1609_v46  ;;  %vm1596_vm15 = vweird.f32 %v1590_v54  ;;  %v1580_v18 = vmul.f32 %v1579_v37, %v2432_v1 }
 0x6b3   : > { %1831 = vmatmul.msk.f32.vlgmr.msra.gmra.mxu3 %vm1666_vm14, %v1651_v58  ;;  %v1603_v17 = vor.u32 1.1754944e-38, %v1602_v8  ;;  %vm1601_vm3 = vcmp.eq.f32.partialorder %v1600_v14, 8.507059e+37 }
 0x6b4   : > { %v1624_v60 = vadd.f32 0.014752088, %v1623_v25  ;;  %v1613_v62 = vadd.f32 0.0036580483, %v1612_v48 }
 0x6b6   : > { %v1625_v63 = vmul.f32 %v1624_v60, %v1609_v46  ;;  %v1614_v6 = vmul.f32 %v1613_v62, %v1609_v46 }
 0x6b7   : > { %v1954_v0 = vpop.eup %1953 }
 0x6b8   : > { %v1592_v3 = vmul.f32 %v1954_v0, %v1590_v54  ;;  %v1626_v4 = vadd.f32 0.112945676, %v1625_v63  ;;  %vm1597_vm13 = vweird.f32 %v1954_v0  ;;  %v1615_v29 = vadd.f32 0.05243302, %v1614_v6 }
 0x6b9   : > { %vm1598_vm0 = vmor %vm1596_vm15, %vm1597_vm13 }
 0x6ba   : > { %v1593_v9 = vsub.f32 1.0, %v1592_v3  ;;  %v1627_v10 = vmul.f32 %v1626_v4, %v1609_v46  ;;  %v1616_v22 = vmul.f32 %v1615_v29, %v1609_v46 }
 0x6bc   : > { %v1594_v13 = vmul.f32 %v1954_v0, %v1593_v9  ;;  %v1628_v11 = vadd.f32 0.4994258, %v1627_v10  ;;  %v1617_v32 = vadd.f32 0.18741608, %v1616_v22 }
 0x6be   : > { %v1595_v15 = vadd.f32 %v1954_v0, %v1594_v13  ;;  %v1629_v12 = vmul.f32 %v1628_v11, %v1609_v46  ;;  %v1618_v21 = vmul.f32 %v1617_v32, %v1609_v46 }
 0x6c0   : > { %v1599_v39 = vsel %vm1598_vm0, %v1954_v0, %v1595_v15  ;;  %v1630_v19 = vadd.f32 1.0, %v1629_v12  ;;  %v1619_v36 = vadd.f32 1.1283791, %v1618_v21 }
 0x6c1   : > { %v1604_v20 = vsel %vm1601_vm3, %v1603_v17, %v1599_v39 }
 0x6c2   : > { %v1605_v57 = vmul.f32 %v1604_v20, %v1580_v18  ;;  %1955 = vrcp.f32 %v1630_v19  ;;  %v1642_v1 = vand.u32 2147483648, %v1630_v19  ;;  %v1640_v5 = vand.u32 2147483647, %v1630_v19 }
 0x6c3   : > { %vm1636_vm5 = vweird.f32 %v1630_v19  ;;  %v1620_v61 = vmul.f32 %v1619_v36, %v2442_v28 }
 0x6c4   : > { %v1829_v23 = vclamps-f32 %v1605_v57, 1.0  ;;  %v1643_v42 = vor.u32 1.1754944e-38, %v1642_v1  ;;  %vm1641_vm7 = vcmp.eq.f32.partialorder %v1640_v5, 8.507059e+37 }
 0x6c6   : > { %v1649_v7 = vadd.f32 1.0, %v1829_v23 }
 0x6c8   : > { %v1956_v30 = vpop.eup %1955  ;;  %v1652_v16 = vmul.f32 %v1649_v7, %v1523_v27 }
 0x6c9   : > { %v1632_v33 = vmul.f32 %v1956_v30, %v1630_v19  ;;  %vm1637_vm4 = vweird.f32 %v1956_v30 }
 0x6ca   : > { %1832 = vmatmul.msk.f32.gmra.mxu3 %vm1666_vm14, %v1652_v16  ;;  %vm1638_vm6 = vmor %vm1636_vm5, %vm1637_vm4 }
 0x6cb   : > { %v1633_v34 = vsub.f32 1.0, %v1632_v33 }
 0x6cd   : > { %v1634_v40 = vmul.f32 %v1956_v30, %v1633_v34 }
 0x6cf   : > { %v1635_v41 = vadd.f32 %v1956_v30, %v1634_v40 }
 0x6d1   : > { %v1639_v43 = vsel %vm1638_vm6, %v1956_v30, %v1635_v41 }
 0x6d2   : > { %v1644_v44 = vsel %vm1641_vm7, %v1643_v42, %v1639_v43 }
 0x6d3   : > { %v1645_v46 = vmul.f32 %v1644_v44, %v1620_v61 }
 0x6d5   : > { %v1830_v47 = vclamps-f32 %v1645_v46, 1.0 }
 0x6d7   : > { %v1650_v50 = vadd.f32 1.0, %v1830_v47 }
 0x6d9   : > { %v1653_v51 = vmul.f32 %v1650_v50, %v1524_v49 }
 0x6db   : > { %1833 = vmatmul.msk.f32.gmra.mxu3 %vm1666_vm14, %v1653_v51 }
 0x736   : > { %v1693_v53 = vpop.f32.mrf.mxu3 }
 0x737   : > { %v1694_v54 = vadd.f32 %v1888_v52, %v1693_v53 }
 0x739   : > { %v1702_v28 = vadd.f32 %v1694_v54, %v2346_v26 }
 0x73b   : > { %1705 = vst.msk [vmem:[%s481_s17] sm:$0xff] %vm501_vm2, %v1702_v28 }
 0x74d   : > { %v1696_v24 = vpop.f32.mrf.mxu3 }
 0x74e   : > { %v1697_v55 = vadd.f32 %v1888_v52, %v1696_v24 }
 0x750   : > { %v1703_v38 = vadd.f32 %v1697_v55, %v2351_v31 }
 0x752   : > { %1706 = vst.msk [vmem:[%s481_s17 + $0x8] sm:$0xff] %vm501_vm2, %v1703_v38 }
 0x75e   : > { %v1699_v45 = vpop.f32.mrf.mxu3 }
 0x75f   : > { %v1700_v56 = vadd.f32 %v1888_v52, %v1699_v45 }
 0x761   : > { %v1704_v48 = vadd.f32 %v1700_v56, %v2356_v35 }
 0x763   : > { %1707 = vst.msk [vmem:[%s481_s17 + $0x10] sm:$0x1] %vm508_vm1, %v1704_v48 }
 0x764 PF: > { %s24_s29 = sadd.s32 1, %s1965_s29  }
 0x765   : > { %p21_p4 = scmp.ge.s32.totalorder %s24_s29, 6  }
 0x767   :  { %23 = sbr.rel (!%p21_p4) target bundleno = 1 (0x1), region = 109 }

</bundles_post_ra>
